<compile_context>
chip_gen: v7x
topology: tpu7x:2x2x1
jax: 0.10.0
libtpu: 0.0.40
codegen_flags: <defaults>
</compile_context>

<pallas_src>
import jax
import jax.numpy as jnp
from jax import lax
from jax.experimental import pallas as pl
from jax.experimental.pallas import tpu as pltpu

N_PAD = 128                      # lane-dense output width for every kernel
TM_CAP = 2048                    # max rows per grid step
VMEM_LIMIT = 48 * 1024 * 1024    # > v5e 16MiB scoped default, < v7x 64MiB phys


def _round_up(x, m):
    return (x + m - 1) // m * m


def _choose_tiles(m, tm_cap=TM_CAP):
    """Return (padded_M, tile_M).

    tile_M is 16-aligned (safe second-minor for bf16 blocks) and ~<= tm_cap;
    >=2 grid steps whenever M is large enough (both v7x TensorCores get work);
    padded-row waste is bounded by <16 rows per step, not a whole tile.
    """
    n_steps = max(-(-m // tm_cap), 2 if m >= 64 else 1)
    tm = _round_up(-(-m // n_steps), 16)
    return tm * n_steps, tm


# ----------------------------------------------------------------------------
# Pallas kernels
# ----------------------------------------------------------------------------
def _conv_pool_relu_kernel(t_ref, w_ref, b_ref, o_ref):
    """Fused conv(matmul) + bias + 2x2 maxpool + relu.

    t_ref: (4, tm, Kp) bf16 -- im2col patches, one leading group per pool tap
    w_ref: (Kp, 128)   bf16 -- zero-padded conv weight matrix
    b_ref: (1, 128)    f32  -- zero-padded bias
    o_ref: (tm, 128)   bf16
    """
    T, tm, K = t_ref.shape
    x = t_ref[...].reshape(T * tm, K)            # leading-dim collapse (layout-free)
    s = jnp.dot(x, w_ref[...], preferred_element_type=jnp.float32)
    m = jnp.max(s.reshape(T, tm, -1), axis=0)    # 2x2 maxpool across the 4 taps
    o_ref[...] = jnp.maximum(m + b_ref[...], 0.0).astype(o_ref.dtype)


def conv_pool_relu(taps, w, b):
    """taps: (4, M, Kp) bf16, w: (Kp, 128) bf16, b: (1, 128) f32 -> (M, 128) bf16."""
    T, M, K = taps.shape
    N = w.shape[1]
    Mp, tm = _choose_tiles(M)
    if Mp != M:
        taps = jnp.pad(taps, ((0, 0), (0, Mp - M), (0, 0)))
    out = pl.pallas_call(
        _conv_pool_relu_kernel,
        out_shape=jax.ShapeDtypeStruct((Mp, N), jnp.bfloat16),
        grid=(Mp // tm,),
        in_specs=[
            pl.BlockSpec((T, tm, K), lambda i: (0, i, 0)),
            pl.BlockSpec((K, N), lambda i: (0, 0)),
            pl.BlockSpec((1, N), lambda i: (0, 0)),
        ],
        out_specs=pl.BlockSpec((tm, N), lambda i: (i, 0)),
        compiler_params=pltpu.CompilerParams(
            dimension_semantics=("parallel",),
            vmem_limit_bytes=VMEM_LIMIT),
    )(taps, w, b)
    return out[:M]


def _fc_logsoftmax_kernel(x_ref, w_ref, b_ref, o_ref):
    """fc + log_softmax.  Padded logit columns carry a -1e30 bias so they do
    not perturb the max / logsumexp reduction."""
    logits = (
        jnp.dot(x_ref[...], w_ref[...], preferred_element_type=jnp.float32)
        + b_ref[...]
    )
    m = jnp.max(logits, axis=-1, keepdims=True)
    lse = jnp.log(jnp.sum(jnp.exp(logits - m), axis=-1, keepdims=True)) + m
    o_ref[...] = logits - lse


def fc_logsoftmax(x, w, b):
    """x: (M, Kp) bf16, w: (Kp, 128) bf16, b: (1, 128) f32 -> (M, 128) f32."""
    M, K = x.shape
    N = w.shape[1]
    Mp, tm = _choose_tiles(M)
    if Mp != M:
        x = jnp.pad(x, ((0, Mp - M), (0, 0)))
    out = pl.pallas_call(
        _fc_logsoftmax_kernel,
        out_shape=jax.ShapeDtypeStruct((Mp, N), jnp.float32),
        grid=(Mp // tm,),
        in_specs=[
            pl.BlockSpec((tm, K), lambda i: (i, 0)),
            pl.BlockSpec((K, N), lambda i: (0, 0)),
            pl.BlockSpec((1, N), lambda i: (0, 0)),
        ],
        out_specs=pl.BlockSpec((tm, N), lambda i: (i, 0)),
        compiler_params=pltpu.CompilerParams(
            dimension_semantics=("parallel",),
            vmem_limit_bytes=VMEM_LIMIT),
    )(x, w, b)
    return out[:M]


# ----------------------------------------------------------------------------
# Glue: pool-tap im2col, weight/bias padding, full forward
# ----------------------------------------------------------------------------
def im2col_pool_taps(x_nhwc, k, pad, kpad, c_real=None):
    """(B, H, W, C) bf16 -> (4, B*(H//2)*(W//2), kpad) bf16.

    Builds the im2col rows of the four 2x2-maxpool taps directly from stride-2
    slices of the zero-padded image (no full patches tensor).  The channel
    slice of a lane-padded (128-wide) activation is folded in via `c_real`.
    """
    if c_real is not None and c_real < x_nhwc.shape[-1]:
        x_nhwc = x_nhwc[..., :c_real]
    B, H, W, C = x_nhwc.shape
    Ho, Wo = H // 2, W // 2
    xp = jnp.pad(x_nhwc, ((0, 0), (pad, pad), (pad, pad), (0, 0)))
    taps = []
    for py in range(2):
        for px in range(2):
            cols = [
                xp[:, py + dy:py + dy + 2 * Ho:2, px + dx:px + dx + 2 * Wo:2, :]
                for dy in range(k) for dx in range(k)
            ]
            taps.append(
                jnp.concatenate(cols, axis=-1).reshape(B * Ho * Wo, k * k * C))
    taps = jnp.stack(taps, axis=0)
    K = k * k * C
    if kpad > K:
        taps = jnp.pad(taps, ((0, 0), (0, 0), (0, kpad - K)))
    return taps


def conv_weight_mat(w_oihw, kpad, npad):
    """torch (O, I, kh, kw) conv weight -> zero-padded (kpad, npad) bf16 matrix."""
    O, I, kh, kw = w_oihw.shape
    wm = jnp.transpose(w_oihw, (2, 3, 1, 0)).reshape(kh * kw * I, O)
    wm = jnp.pad(wm, ((0, kpad - kh * kw * I), (0, npad - O)))
    return wm.astype(jnp.bfloat16)


def pad_bias(b, npad, pad_value=0.0):
    b = jnp.pad(b, (0, npad - b.shape[0]), constant_values=pad_value)
    return b.reshape(1, npad).astype(jnp.float32)


def init_params(key):
    k1, k2, k3, k4, k5, k6 = jax.random.split(key, 6)
    w1 = jax.random.normal(k1, (10, 1, 5, 5), jnp.float32) * (1.0 / 5.0)
    b1 = jax.random.normal(k2, (10,), jnp.float32) * 0.05
    w2 = jax.random.normal(k3, (20, 10, 5, 5), jnp.float32) * (1.0 / 25.0)
    b2 = jax.random.normal(k4, (20,), jnp.float32) * 0.05
    wf = jax.random.normal(k5, (980, 10), jnp.float32) * (1.0 / 980.0 ** 0.5)
    bf = jax.random.normal(k6, (10,), jnp.float32) * 0.05
    return dict(w1=w1, b1=b1, w2=w2, b2=b2, wf=wf, bf=bf)


def net_forward(x_nchw, params):
    """x: (B, 1, 28, 28) float32 -> log-probabilities (B, 10) float32."""
    B = x_nchw.shape[0]
    x = jnp.transpose(x_nchw, (0, 2, 3, 1)).astype(jnp.bfloat16)       # NHWC bf16

    # layer 1: conv1 + bias + maxpool2 + relu (one fused Pallas kernel), bf16 out
    t1 = im2col_pool_taps(x, 5, 2, 32)                                 # (4, B*196, 32)
    h1 = conv_pool_relu(t1, conv_weight_mat(params["w1"], 32, N_PAD),
                        pad_bias(params["b1"], N_PAD))                 # (B*196, 128)
    h1 = h1.reshape(B, 14, 14, N_PAD)

    # layer 2: conv2 + bias + maxpool2 + relu (channel slice folded into taps)
    t2 = im2col_pool_taps(h1, 5, 2, 256, c_real=10)                    # (4, B*49, 256)
    h2 = conv_pool_relu(t2, conv_weight_mat(params["w2"], 256, N_PAD),
                        pad_bias(params["b2"], N_PAD))                 # (B*49, 128)
    h2 = h2.reshape(B, 49, N_PAD)

    # fc + log_softmax: torch's NCHW flatten order is folded into a row
    # permutation of the fc weight, so the NHWC activation needs no transpose.
    wf = jnp.transpose(params["wf"].reshape(20, 7, 7, 10),
                       (1, 2, 0, 3)).reshape(980, 10)
    wf = jnp.pad(wf, ((0, 1024 - 980), (0, N_PAD - 10))).astype(jnp.bfloat16)
    flat = jnp.pad(h2[:, :, :20].reshape(B, 980), ((0, 0), (0, 1024 - 980)))
    out = fc_logsoftmax(flat, wf, pad_bias(params["bf"], N_PAD, pad_value=-1e30))
    return out[:, :10]


# ----------------------------------------------------------------------------
# Pure-JAX reference (same bf16-input / f32-accumulate matmul contract)
# ----------------------------------------------------------------------------
def ref_forward(x, params):
    def conv(x, w, b):
        y = lax.conv_general_dilated(
            x.astype(jnp.bfloat16), w.astype(jnp.bfloat16), (1, 1),
            ((2, 2), (2, 2)), dimension_numbers=("NCHW", "OIHW", "NCHW"),
            preferred_element_type=jnp.float32)
        return y + b[None, :, None, None]

    def mp(x):
        return lax.reduce_window(
            x, -jnp.inf, lax.max, (1, 1, 2, 2), (1, 1, 2, 2), "VALID")

    y = jax.nn.relu(mp(conv(x, params["w1"], params["b1"])))
    y = jax.nn.relu(mp(conv(y, params["w2"], params["b2"])))
    y = y.reshape(x.shape[0], -1)
    logits = jnp.dot(y.astype(jnp.bfloat16), params["wf"].astype(jnp.bfloat16),
                     preferred_element_type=jnp.float32) + params["bf"]
    return jax.nn.log_softmax(logits, axis=-1)


if __name__ == "__main__":
    key = jax.random.PRNGKey(0)
    kx, kp = jax.random.split(key)
    # fc expects 980 = 20*7*7 features -> input spatial size must be 28x28
    x = jax.random.normal(kx, (2, 1, 28, 28), jnp.float32)
    params = init_params(kp)

    out = jax.block_until_ready(jax.jit(net_forward)(x, params))
    ref = jax.block_until_ready(jax.jit(ref_forward)(x, params))

    assert out.shape == (2, 10)
    assert bool(jnp.all(jnp.isfinite(out)))
    # rows of exp(log_softmax) must sum to 1
    assert jnp.allclose(jnp.sum(jnp.exp(out), axis=-1), 1.0, atol=1e-4)
    assert jnp.allclose(out, ref, atol=5e-3, rtol=5e-3)

    print("KERNEL_OK")
</pallas_src>

<mosaic_0001>
module attributes {stable_mosaic.version = 11 : i64} {
  func.func @_conv_pool_relu_kernel(%arg0: i32, %arg1: memref<4x208x32xbf16, #tpu.memory_space<vmem>>, %arg2: memref<32x128xbf16, #tpu.memory_space<vmem>>, %arg3: memref<1x128xf32, #tpu.memory_space<vmem>>, %arg4: memref<208x128xbf16, #tpu.memory_space<vmem>>) attributes {dimension_semantics = [#tpu.dimension_semantics<parallel>], iteration_bounds = array<i64: 2>, scalar_prefetch = 0 : i64, scratch_operands = 0 : i64, tpu.core_type = #tpu.core_type<tc>, window_params = [{transform_indices = @transform_0, window_bounds = array<i64: 4, 208, 32>}, {pipeline_mode = #tpu.pipeline_mode<synchronous>, transform_indices = @transform_1, window_bounds = array<i64: 32, 128>}, {pipeline_mode = #tpu.pipeline_mode<synchronous>, transform_indices = @transform_2, window_bounds = array<i64: 1, 128>}, {transform_indices = @transform_3, window_bounds = array<i64: 208, 128>}]} {
    %c0 = arith.constant 0 : index
    %c0_0 = arith.constant 0 : index
    %c0_1 = arith.constant 0 : index
    %0 = vector.load %arg1[%c0, %c0_0, %c0_1] : memref<4x208x32xbf16, #tpu.memory_space<vmem>>, vector<4x208x32xbf16>
    %1 = vector.shape_cast %0 : vector<4x208x32xbf16> to vector<832x32xbf16>
    %c0_2 = arith.constant 0 : index
    %c0_3 = arith.constant 0 : index
    %2 = vector.load %arg2[%c0_2, %c0_3] : memref<32x128xbf16, #tpu.memory_space<vmem>>, vector<32x128xbf16>
    %cst = arith.constant dense<0.000000e+00> : vector<832x128xf32>
    %3 = tpu.matmul %1, %2, %cst {dimension_numbers = #tpu.dot_dimension_numbers<[1], [0], [0], [1], [0, 0, 1, 1], [], []>} : vector<832x32xbf16>, vector<32x128xbf16>, vector<832x128xf32> -> vector<832x128xf32>
    %4 = vector.shape_cast %3 : vector<832x128xf32> to vector<4x208x128xf32>
    %cst_4 = arith.constant dense<0xFF800000> : vector<208x128xf32>
    %5 = vector.multi_reduction <maximumf>, %4, %cst_4 [0] : vector<4x208x128xf32> to vector<208x128xf32>
    %c0_5 = arith.constant 0 : index
    %c0_6 = arith.constant 0 : index
    %6 = vector.load %arg3[%c0_5, %c0_6] : memref<1x128xf32, #tpu.memory_space<vmem>>, vector<1x128xf32>
    %7 = vector.broadcast %6 : vector<1x128xf32> to vector<208x128xf32>
    %8 = arith.addf %5, %7 : vector<208x128xf32>
    %cst_7 = arith.constant 0.000000e+00 : f32
    %9 = vector.broadcast %cst_7 : f32 to vector<208x128xf32>
    %10 = arith.maximumf %8, %9 : vector<208x128xf32>
    %11 = arith.truncf %10 : vector<208x128xf32> to vector<208x128xbf16>
    %c0_8 = arith.constant 0 : index
    %c0_9 = arith.constant 0 : index
    %12 = vector.load %arg4[%c0_8, %c0_9] : memref<208x128xbf16, #tpu.memory_space<vmem>>, vector<208x128xbf16>
    tpu.vector_store %arg4[%c0_8, %c0_9], %11 {strides = array<i32>} : memref<208x128xbf16, #tpu.memory_space<vmem>>, vector<208x128xbf16>,
    return
  }
  func.func @transform_0(%arg0: i32) -> (i32, i32, i32) {
    %c0_i32 = arith.constant 0 : i32
    %c0_i32_0 = arith.constant 0 : i32
    %c0_i32_1 = arith.constant 0 : i32
    return %c0_i32, %arg0, %c0_i32_0 : i32, i32, i32
  }
  func.func @transform_1(%arg0: i32) -> (i32, i32) {
    %c0_i32 = arith.constant 0 : i32
    %c0_i32_0 = arith.constant 0 : i32
    %c0_i32_1 = arith.constant 0 : i32
    return %c0_i32, %c0_i32_0 : i32, i32
  }
  func.func @transform_2(%arg0: i32) -> (i32, i32) {
    %c0_i32 = arith.constant 0 : i32
    %c0_i32_0 = arith.constant 0 : i32
    %c0_i32_1 = arith.constant 0 : i32
    return %c0_i32, %c0_i32_0 : i32, i32
  }
  func.func @transform_3(%arg0: i32) -> (i32, i32) {
    %c0_i32 = arith.constant 0 : i32
    %c0_i32_0 = arith.constant 0 : i32
    return %arg0, %c0_i32 : i32, i32
  }
}

module attributes {stable_mosaic.version = 11 : i64} {
  func.func @_conv_pool_relu_kernel(%arg0: i32, %arg1: memref<4x64x256xbf16, #tpu.memory_space<vmem>>, %arg2: memref<256x128xbf16, #tpu.memory_space<vmem>>, %arg3: memref<1x128xf32, #tpu.memory_space<vmem>>, %arg4: memref<64x128xbf16, #tpu.memory_space<vmem>>) attributes {dimension_semantics = [#tpu.dimension_semantics<parallel>], iteration_bounds = array<i64: 2>, scalar_prefetch = 0 : i64, scratch_operands = 0 : i64, tpu.core_type = #tpu.core_type<tc>, window_params = [{transform_indices = @transform_0, window_bounds = array<i64: 4, 64, 256>}, {pipeline_mode = #tpu.pipeline_mode<synchronous>, transform_indices = @transform_1, window_bounds = array<i64: 256, 128>}, {pipeline_mode = #tpu.pipeline_mode<synchronous>, transform_indices = @transform_2, window_bounds = array<i64: 1, 128>}, {transform_indices = @transform_3, window_bounds = array<i64: 64, 128>}]} {
    %c0 = arith.constant 0 : index
    %c0_0 = arith.constant 0 : index
    %c0_1 = arith.constant 0 : index
    %0 = vector.load %arg1[%c0, %c0_0, %c0_1] : memref<4x64x256xbf16, #tpu.memory_space<vmem>>, vector<4x64x256xbf16>
    %1 = vector.shape_cast %0 : vector<4x64x256xbf16> to vector<256x256xbf16>
    %c0_2 = arith.constant 0 : index
    %c0_3 = arith.constant 0 : index
    %2 = vector.load %arg2[%c0_2, %c0_3] : memref<256x128xbf16, #tpu.memory_space<vmem>>, vector<256x128xbf16>
    %cst = arith.constant dense<0.000000e+00> : vector<256x128xf32>
    %3 = tpu.matmul %1, %2, %cst {dimension_numbers = #tpu.dot_dimension_numbers<[1], [0], [0], [1], [0, 0, 1, 1], [], []>} : vector<256x256xbf16>, vector<256x128xbf16>, vector<256x128xf32> -> vector<256x128xf32>
    %4 = vector.shape_cast %3 : vector<256x128xf32> to vector<4x64x128xf32>
    %cst_4 = arith.constant dense<0xFF800000> : vector<64x128xf32>
    %5 = vector.multi_reduction <maximumf>, %4, %cst_4 [0] : vector<4x64x128xf32> to vector<64x128xf32>
    %c0_5 = arith.constant 0 : index
    %c0_6 = arith.constant 0 : index
    %6 = vector.load %arg3[%c0_5, %c0_6] : memref<1x128xf32, #tpu.memory_space<vmem>>, vector<1x128xf32>
    %7 = vector.broadcast %6 : vector<1x128xf32> to vector<64x128xf32>
    %8 = arith.addf %5, %7 : vector<64x128xf32>
    %cst_7 = arith.constant 0.000000e+00 : f32
    %9 = vector.broadcast %cst_7 : f32 to vector<64x128xf32>
    %10 = arith.maximumf %8, %9 : vector<64x128xf32>
    %11 = arith.truncf %10 : vector<64x128xf32> to vector<64x128xbf16>
    %c0_8 = arith.constant 0 : index
    %c0_9 = arith.constant 0 : index
    %12 = vector.load %arg4[%c0_8, %c0_9] : memref<64x128xbf16, #tpu.memory_space<vmem>>, vector<64x128xbf16>
    tpu.vector_store %arg4[%c0_8, %c0_9], %11 {strides = array<i32>} : memref<64x128xbf16, #tpu.memory_space<vmem>>, vector<64x128xbf16>,
    return
  }
  func.func @transform_0(%arg0: i32) -> (i32, i32, i32) {
    %c0_i32 = arith.constant 0 : i32
    %c0_i32_0 = arith.constant 0 : i32
    %c0_i32_1 = arith.constant 0 : i32
    return %c0_i32, %arg0, %c0_i32_0 : i32, i32, i32
  }
  func.func @transform_1(%arg0: i32) -> (i32, i32) {
    %c0_i32 = arith.constant 0 : i32
    %c0_i32_0 = arith.constant 0 : i32
    %c0_i32_1 = arith.constant 0 : i32
    return %c0_i32, %c0_i32_0 : i32, i32
  }
  func.func @transform_2(%arg0: i32) -> (i32, i32) {
    %c0_i32 = arith.constant 0 : i32
    %c0_i32_0 = arith.constant 0 : i32
    %c0_i32_1 = arith.constant 0 : i32
    return %c0_i32, %c0_i32_0 : i32, i32
  }
  func.func @transform_3(%arg0: i32) -> (i32, i32) {
    %c0_i32 = arith.constant 0 : i32
    %c0_i32_0 = arith.constant 0 : i32
    return %arg0, %c0_i32 : i32, i32
  }
}

module attributes {stable_mosaic.version = 11 : i64} {
  func.func @_fc_logsoftmax_kernel(%arg0: i32, %arg1: memref<16x1024xbf16, #tpu.memory_space<vmem>>, %arg2: memref<1024x128xbf16, #tpu.memory_space<vmem>>, %arg3: memref<1x128xf32, #tpu.memory_space<vmem>>, %arg4: memref<16x128xf32, #tpu.memory_space<vmem>>) attributes {dimension_semantics = [#tpu.dimension_semantics<parallel>], iteration_bounds = array<i64: 1>, scalar_prefetch = 0 : i64, scratch_operands = 0 : i64, tpu.core_type = #tpu.core_type<tc>, window_params = [{transform_indices = @transform_0, window_bounds = array<i64: 16, 1024>}, {pipeline_mode = #tpu.pipeline_mode<synchronous>, transform_indices = @transform_1, window_bounds = array<i64: 1024, 128>}, {pipeline_mode = #tpu.pipeline_mode<synchronous>, transform_indices = @transform_2, window_bounds = array<i64: 1, 128>}, {transform_indices = @transform_3, window_bounds = array<i64: 16, 128>}]} {
    %c0 = arith.constant 0 : index
    %c0_0 = arith.constant 0 : index
    %0 = vector.load %arg1[%c0, %c0_0] : memref<16x1024xbf16, #tpu.memory_space<vmem>>, vector<16x1024xbf16>
    %c0_1 = arith.constant 0 : index
    %c0_2 = arith.constant 0 : index
    %1 = vector.load %arg2[%c0_1, %c0_2] : memref<1024x128xbf16, #tpu.memory_space<vmem>>, vector<1024x128xbf16>
    %cst = arith.constant dense<0.000000e+00> : vector<16x128xf32>
    %2 = tpu.matmul %0, %1, %cst {dimension_numbers = #tpu.dot_dimension_numbers<[1], [0], [0], [1], [0, 0, 1, 1], [], []>} : vector<16x1024xbf16>, vector<1024x128xbf16>, vector<16x128xf32> -> vector<16x128xf32>
    %c0_3 = arith.constant 0 : index
    %c0_4 = arith.constant 0 : index
    %3 = vector.load %arg3[%c0_3, %c0_4] : memref<1x128xf32, #tpu.memory_space<vmem>>, vector<1x128xf32>
    %4 = vector.broadcast %3 : vector<1x128xf32> to vector<16x128xf32>
    %5 = arith.addf %2, %4 : vector<16x128xf32>
    %cst_5 = arith.constant dense<0xFF800000> : vector<16xf32>
    %6 = vector.multi_reduction <maximumf>, %5, %cst_5 [1] : vector<16x128xf32> to vector<16xf32>
    %7 = vector.shape_cast %6 : vector<16xf32> to vector<16x1xf32>
    %8 = vector.broadcast %7 : vector<16x1xf32> to vector<16x128xf32>
    %9 = arith.subf %5, %8 : vector<16x128xf32>
    %10 = math.exp %9 : vector<16x128xf32>
    %cst_6 = arith.constant dense<0.000000e+00> : vector<16xf32>
    %11 = vector.multi_reduction <add>, %10, %cst_6 [1] : vector<16x128xf32> to vector<16xf32>
    %12 = vector.shape_cast %11 : vector<16xf32> to vector<16x1xf32>
    %13 = math.log %12 : vector<16x1xf32>
    %14 = arith.addf %13, %7 : vector<16x1xf32>
    %15 = vector.broadcast %14 : vector<16x1xf32> to vector<16x128xf32>
    %16 = arith.subf %5, %15 : vector<16x128xf32>
    %c0_7 = arith.constant 0 : index
    %c0_8 = arith.constant 0 : index
    %17 = vector.load %arg4[%c0_7, %c0_8] : memref<16x128xf32, #tpu.memory_space<vmem>>, vector<16x128xf32>
    tpu.vector_store %arg4[%c0_7, %c0_8], %16 {strides = array<i32>} : memref<16x128xf32, #tpu.memory_space<vmem>>, vector<16x128xf32>,
    return
  }
  func.func @transform_0(%arg0: i32) -> (i32, i32) {
    %c0_i32 = arith.constant 0 : i32
    %c0_i32_0 = arith.constant 0 : i32
    return %arg0, %c0_i32 : i32, i32
  }
  func.func @transform_1(%arg0: i32) -> (i32, i32) {
    %c0_i32 = arith.constant 0 : i32
    %c0_i32_0 = arith.constant 0 : i32
    %c0_i32_1 = arith.constant 0 : i32
    return %c0_i32, %c0_i32_0 : i32, i32
  }
  func.func @transform_2(%arg0: i32) -> (i32, i32) {
    %c0_i32 = arith.constant 0 : i32
    %c0_i32_0 = arith.constant 0 : i32
    %c0_i32_1 = arith.constant 0 : i32
    return %c0_i32, %c0_i32_0 : i32, i32
  }
  func.func @transform_3(%arg0: i32) -> (i32, i32) {
    %c0_i32 = arith.constant 0 : i32
    %c0_i32_0 = arith.constant 0 : i32
    return %arg0, %c0_i32 : i32, i32
  }
}

</mosaic_0001>

<bundles_post_ra>
// kernel: net_forward.3
= control target key start
LH: loop header
LB: loop body
LE: loop exit
PB: predicated region body
PF: predicated region fallthrough
CT: control target
= control target key end

     0   :  { %s2479_s12 = smov 0   ;;  %s2481_s13 = smov 0   ;;  %s2941_s0 = inlined_call_operand.vmem [shape: bf16[4,416,32], index: 0, kind: input, shape index: {}]   ;;  %s2942_s1 = inlined_call_operand.vmem [shape: bf16[32,128], index: 1, kind: input, shape index: {}]   ;;  %s2943_s2 = inlined_call_operand.vmem [shape: f32[1,128], index: 2, kind: input, shape index: {}]   ;;  %s2944_s3 = inlined_call_operand.vmem [shape: bf16[416,128], index: 3, kind: output, shape index: {}]  }
   0x1   :  { %s2483_s14 = smov 0  }
   0x2 LB: > { %s1943_s15 = sadd.s32 4294967295, %s2457_s14   ;;  %s2496_s16 = sadd.s32 1, %s2457_s14   ;;  %s2457_s14 = sphi %s2483_s14, %s2955_s14   ;;  %s2453_s13 = sphi %s2481_s13, %s2954_s13   ;;  %s2449_s12 = sphi %s2479_s12, %s2953_s12  }
   0x3   : > { %s17_s17 = ssub.s32 %s2457_s14, %s2496_s16  ;;  %s20_s18 = sadd.s32 1, %s2453_s13 }
   0x4   : > { %p18_p0 = scmp.eq.s32.totalorder %s17_s17, 0  ;;  %p27_p1 = scmp.ne.s32.totalorder %s2453_s13, %s2449_s12 }
   0x5   : > { %p28_p2 = scmp.eq.s32.totalorder %s2457_s14, 0  ;;  %p1946_p4 = scmp.ge.s32.totalorder %s2457_s14, 2 }
   0x6   : > { %s2505_s19 = scalar_select %p18_p0, %s2453_s13, %s20_s18  }
   0x7   : > { %p29_p3 = por %p28_p2, %p27_p1  ;;  %127 = sbr.rel (%p1946_p4) target bundleno = 45 (0x2d), region = 24 }
   0xe   : > { %130 = sbr.rel (!%p29_p3) target bundleno = 45 (0x2d), region = 28  ;;  %s132_s20 = sand.u32 (%p29_p3), 1, %s2453_s13  }
   0xf   : > { %s2085_s21 = smul.u32 (%p29_p3), 104, %s2457_s14 }
  0x10   : > { %s2355_s22 = smul.u32 (%p29_p3), 416, %s132_s20 }
  0x11   : > { %s2513_s25 = scalar_lea.vmem (%p29_p3), %s2941_s0, %s2085_s21 }
  0x12   : > { %v153_v0 = vld [vmem:[%s2513_s25] sm:$0xff] (%p29_p3)   ;;  %v157_v1 = vld [vmem:[%s2513_s25 + $0x8] sm:$0xff] (%p29_p3)   ;;  %v161_v2 = vld [vmem:[%s2513_s25 + $0x10] sm:$0xff] (%p29_p3)   ;;  %s2518_s26 = scalar_lea.vmem (%p29_p3), [#allocation2], %s2355_s22 }
  0x13   : > { %154 = vst [vmem:[%s2518_s26] sm:$0xff] (%p29_p3), %v153_v0   ;;  %158 = vst [vmem:[%s2518_s26 + $0x8] sm:$0xff] (%p29_p3), %v157_v1   ;;  %v165_v3 = vld [vmem:[%s2513_s25 + $0x18] sm:$0xff] (%p29_p3)   ;;  %v169_v4 = vld [vmem:[%s2513_s25 + $0x20] sm:$0xff] (%p29_p3)  }
  0x14   : > { %162 = vst [vmem:[%s2518_s26 + $0x10] sm:$0xff] (%p29_p3), %v161_v2   ;;  %v173_v5 = vld [vmem:[%s2513_s25 + $0x28] sm:$0xff] (%p29_p3)   ;;  %166 = vst [vmem:[%s2518_s26 + $0x18] sm:$0xff] (%p29_p3), %v165_v3   ;;  %v177_v6 = vld [vmem:[%s2513_s25 + $0x30] sm:$0xff] (%p29_p3)  }
  0x15   : > { %170 = vst [vmem:[%s2518_s26 + $0x20] sm:$0xff] %v169_v4   ;;  %174 = vst [vmem:[%s2518_s26 + $0x28] sm:$0xff] %v173_v5   ;;  %v181_v7 = vld [vmem:[%s2513_s25 + $0x38] sm:$0xff]   ;;  %v185_v8 = vld [vmem:[%s2513_s25 + $0x40] sm:$0xff]  }
  0x16   : > { %178 = vst [vmem:[%s2518_s26 + $0x30] sm:$0xff] %v177_v6   ;;  %182 = vst [vmem:[%s2518_s26 + $0x38] sm:$0xff] %v181_v7   ;;  %v189_v9 = vld [vmem:[%s2513_s25 + $0x48] sm:$0xff]   ;;  %v193_v10 = vld [vmem:[%s2513_s25 + $0x50] sm:$0xff]  }
  0x17   : > { %186 = vst [vmem:[%s2518_s26 + $0x40] sm:$0xff] %v185_v8   ;;  %v197_v11 = vld [vmem:[%s2513_s25 + $0x58] sm:$0xff]   ;;  %190 = vst [vmem:[%s2518_s26 + $0x48] sm:$0xff] %v189_v9   ;;  %v201_v12 = vld [vmem:[%s2513_s25 + $0x60] sm:$0xff]  }
  0x18   : > { %194 = vst [vmem:[%s2518_s26 + $0x50] sm:$0xff] %v193_v10   ;;  %198 = vst [vmem:[%s2518_s26 + $0x58] sm:$0xff] %v197_v11   ;;  %v205_v13 = vld [vmem:[%s2513_s25 + $0xd0] sm:$0xff]   ;;  %v209_v14 = vld [vmem:[%s2513_s25 + $0xd8] sm:$0xff]  }
  0x19   : > { %202 = vst [vmem:[%s2518_s26 + $0x60] sm:$0xff] %v201_v12   ;;  %206 = vst [vmem:[%s2518_s26 + $0x68] sm:$0xff] %v205_v13   ;;  %v213_v15 = vld [vmem:[%s2513_s25 + $0xe0] sm:$0xff]   ;;  %v217_v16 = vld [vmem:[%s2513_s25 + $0xe8] sm:$0xff]  }
  0x1a   : > { %210 = vst [vmem:[%s2518_s26 + $0x70] sm:$0xff] %v209_v14   ;;  %v221_v17 = vld [vmem:[%s2513_s25 + $0xf0] sm:$0xff]   ;;  %214 = vst [vmem:[%s2518_s26 + $0x78] sm:$0xff] %v213_v15   ;;  %v225_v18 = vld [vmem:[%s2513_s25 + $0xf8] sm:$0xff]  }
  0x1b   : > { %218 = vst [vmem:[%s2518_s26 + $0x80] sm:$0xff] %v217_v16   ;;  %222 = vst [vmem:[%s2518_s26 + $0x88] sm:$0xff] %v221_v17   ;;  %v229_v19 = vld [vmem:[%s2513_s25 + $0x100] sm:$0xff]   ;;  %v233_v20 = vld [vmem:[%s2513_s25 + $0x108] sm:$0xff]  }
  0x1c   : > { %226 = vst [vmem:[%s2518_s26 + $0x90] sm:$0xff] %v225_v18   ;;  %230 = vst [vmem:[%s2518_s26 + $0x98] sm:$0xff] %v229_v19   ;;  %v237_v21 = vld [vmem:[%s2513_s25 + $0x110] sm:$0xff]   ;;  %v241_v22 = vld [vmem:[%s2513_s25 + $0x118] sm:$0xff]  }
  0x1d   : > { %234 = vst [vmem:[%s2518_s26 + $0xa0] sm:$0xff] %v233_v20   ;;  %v245_v23 = vld [vmem:[%s2513_s25 + $0x120] sm:$0xff]   ;;  %238 = vst [vmem:[%s2518_s26 + $0xa8] sm:$0xff] %v237_v21   ;;  %v249_v24 = vld [vmem:[%s2513_s25 + $0x128] sm:$0xff]  }
  0x1e   : > { %242 = vst [vmem:[%s2518_s26 + $0xb0] sm:$0xff] %v241_v22   ;;  %246 = vst [vmem:[%s2518_s26 + $0xb8] sm:$0xff] %v245_v23   ;;  %v253_v25 = vld [vmem:[%s2513_s25 + $0x130] sm:$0xff]   ;;  %v257_v26 = vld [vmem:[%s2513_s25 + $0x1a0] sm:$0xff]  }
  0x1f   : > { %250 = vst [vmem:[%s2518_s26 + $0xc0] sm:$0xff] %v249_v24   ;;  %254 = vst [vmem:[%s2518_s26 + $0xc8] sm:$0xff] %v253_v25   ;;  %v261_v27 = vld [vmem:[%s2513_s25 + $0x1a8] sm:$0xff]   ;;  %v265_v28 = vld [vmem:[%s2513_s25 + $0x1b0] sm:$0xff]  }
  0x20   : > { %258 = vst [vmem:[%s2518_s26 + $0xd0] sm:$0xff] %v257_v26   ;;  %v269_v29 = vld [vmem:[%s2513_s25 + $0x1b8] sm:$0xff]   ;;  %262 = vst [vmem:[%s2518_s26 + $0xd8] sm:$0xff] %v261_v27   ;;  %v273_v30 = vld [vmem:[%s2513_s25 + $0x1c0] sm:$0xff]  }
  0x21   : > { %266 = vst [vmem:[%s2518_s26 + $0xe0] sm:$0xff] %v265_v28   ;;  %270 = vst [vmem:[%s2518_s26 + $0xe8] sm:$0xff] %v269_v29   ;;  %v277_v31 = vld [vmem:[%s2513_s25 + $0x1c8] sm:$0xff]   ;;  %v281_v32 = vld [vmem:[%s2513_s25 + $0x1d0] sm:$0xff]  }
  0x22   : > { %274 = vst [vmem:[%s2518_s26 + $0xf0] sm:$0xff] %v273_v30   ;;  %278 = vst [vmem:[%s2518_s26 + $0xf8] sm:$0xff] %v277_v31   ;;  %v285_v33 = vld [vmem:[%s2513_s25 + $0x1d8] sm:$0xff]   ;;  %v289_v34 = vld [vmem:[%s2513_s25 + $0x1e0] sm:$0xff]  }
  0x23   : > { %282 = vst [vmem:[%s2518_s26 + $0x100] sm:$0xff] %v281_v32   ;;  %v293_v35 = vld [vmem:[%s2513_s25 + $0x1e8] sm:$0xff]   ;;  %286 = vst [vmem:[%s2518_s26 + $0x108] sm:$0xff] %v285_v33   ;;  %v297_v36 = vld [vmem:[%s2513_s25 + $0x1f0] sm:$0xff]  }
  0x24   : > { %290 = vst [vmem:[%s2518_s26 + $0x110] sm:$0xff] %v289_v34   ;;  %294 = vst [vmem:[%s2518_s26 + $0x118] sm:$0xff] %v293_v35   ;;  %v301_v37 = vld [vmem:[%s2513_s25 + $0x1f8] sm:$0xff]   ;;  %v305_v38 = vld [vmem:[%s2513_s25 + $0x200] sm:$0xff]  }
  0x25   : > { %298 = vst [vmem:[%s2518_s26 + $0x120] sm:$0xff] %v297_v36   ;;  %302 = vst [vmem:[%s2518_s26 + $0x128] sm:$0xff] %v301_v37   ;;  %v309_v39 = vld [vmem:[%s2513_s25 + $0x270] sm:$0xff]   ;;  %v313_v40 = vld [vmem:[%s2513_s25 + $0x278] sm:$0xff]  }
  0x26   : > { %306 = vst [vmem:[%s2518_s26 + $0x130] sm:$0xff] %v305_v38   ;;  %v317_v41 = vld [vmem:[%s2513_s25 + $0x280] sm:$0xff]   ;;  %310 = vst [vmem:[%s2518_s26 + $0x138] sm:$0xff] %v309_v39   ;;  %v321_v42 = vld [vmem:[%s2513_s25 + $0x288] sm:$0xff]  }
  0x27   : > { %314 = vst [vmem:[%s2518_s26 + $0x140] sm:$0xff] %v313_v40   ;;  %318 = vst [vmem:[%s2518_s26 + $0x148] sm:$0xff] %v317_v41   ;;  %v325_v43 = vld [vmem:[%s2513_s25 + $0x290] sm:$0xff]   ;;  %v329_v44 = vld [vmem:[%s2513_s25 + $0x298] sm:$0xff]  }
  0x28   : > { %322 = vst [vmem:[%s2518_s26 + $0x150] sm:$0xff] %v321_v42   ;;  %326 = vst [vmem:[%s2518_s26 + $0x158] sm:$0xff] %v325_v43   ;;  %v333_v45 = vld [vmem:[%s2513_s25 + $0x2a0] sm:$0xff]   ;;  %v337_v46 = vld [vmem:[%s2513_s25 + $0x2a8] sm:$0xff]  }
  0x29   : > { %330 = vst [vmem:[%s2518_s26 + $0x160] sm:$0xff] %v329_v44   ;;  %v341_v47 = vld [vmem:[%s2513_s25 + $0x2b0] sm:$0xff]   ;;  %334 = vst [vmem:[%s2518_s26 + $0x168] sm:$0xff] %v333_v45   ;;  %v345_v48 = vld [vmem:[%s2513_s25 + $0x2b8] sm:$0xff]  }
  0x2a   : > { %338 = vst [vmem:[%s2518_s26 + $0x170] sm:$0xff] %v337_v46   ;;  %342 = vst [vmem:[%s2518_s26 + $0x178] sm:$0xff] %v341_v47   ;;  %v349_v49 = vld [vmem:[%s2513_s25 + $0x2c0] sm:$0xff]   ;;  %v353_v50 = vld [vmem:[%s2513_s25 + $0x2c8] sm:$0xff]  }
  0x2b   : > { %346 = vst [vmem:[%s2518_s26 + $0x180] sm:$0xff] %v345_v48   ;;  %350 = vst [vmem:[%s2518_s26 + $0x188] sm:$0xff] %v349_v49   ;;  %v357_v51 = vld [vmem:[%s2513_s25 + $0x2d0] sm:$0xff]  }
  0x2c   : > { %354 = vst [vmem:[%s2518_s26 + $0x190] sm:$0xff] %v353_v50   ;;  %358 = vst [vmem:[%s2518_s26 + $0x198] sm:$0xff] %v357_v51  }
  0x2d PF: > { %p1948_p5 = scmp.ge.s32.totalorder %s2457_s14, 1  ;;  %p590_p6 = scmp.lt.s32.totalorder %s2457_s14, 3 }
  0x2f   : > { %p591_p7 = pnand %p1948_p5, %p590_p6 }
  0x31   : > { %594 = sbr.rel (%p591_p7) target bundleno = 389 (0x185), region = 69 }
  0x38   : > { %v2381_v52 = vld [vmem:[%s2942_s1] sm:$0xff]   ;;  %s597_s29 = sand.u32 1, %s2449_s12   ;;  %v2382_v53 = vld [vmem:[%s2942_s1 + $0x8] sm:$0xff]   ;;  %vm1008_vm0 = vcmask 261120   ;;  %s621_s7 = smul.u32 26, %s1943_s15 }
  0x39   : > { %s2356_s5 = smul.u32 416, %s597_s29  ;;  %2243 = vmatprep.subr.bf16.mxu0 %v2381_v52  ;;  %2351 = vmatprep.subr.bf16.mxu1 %v2381_v52 }
  0x3a   : > { %2244 = vmatpush3.bf16.msra.mxu0 %v2381_v52  ;;  %2353 = vmatpush3.bf16.msra.mxu1 %v2381_v52  ;;  %p622_p8 = scmp.lt.s32.totalorder %s621_s7, 51 }
  0x3b   : > { %2245 = vmatprep.subr.bf16.mxu0 %v2382_v53  ;;  %2352 = vmatprep.subr.bf16.mxu1 %v2382_v53  ;;  %s2630_s6 = scalar_lea.vmem [#allocation2], %s2356_s5 }
  0x3c   : > { %v2383_v54 = vld [vmem:[%s2630_s6] sm:$0xff]   ;;  %v2384_v55 = vld [vmem:[%s2630_s6 + $0x8] sm:$0xff]   ;;  %v2385_v56 = vld [vmem:[%s2630_s6 + $0xd0] sm:$0xff]   ;;  %s2957_s7 = smov (!%p622_p8, %s621_s7), 51 }
  0x3d   : > { %2247 = vmatprep.mubr.msk.bf16.mxu0 %vm1008_vm0, %v2383_v54  ;;  %v2386_v57 = vld [vmem:[%s2630_s6 + $0xd8] sm:$0xff]   ;;  %2299 = vmatprep.mubr.msk.bf16.mxu1 %vm1008_vm0, %v2385_v56  ;;  %v2387_v58 = vld [vmem:[%s2630_s6 + $0x10] sm:$0xff]   ;;  %v2389_v59 = vld [vmem:[%s2630_s6 + $0xe0] sm:$0xff]   ;;  %s1949_s10 = sshll.u32 %s2957_s7, 2 }
  0x3e   : > { %2246 = vmatpush3.bf16.msra.mxu0 %v2382_v53  ;;  %2354 = vmatpush3.bf16.msra.mxu1 %v2382_v53  ;;  %v2388_v60 = vld [vmem:[%s2630_s6 + $0x18] sm:$0xff]   ;;  %v2390_v61 = vld [vmem:[%s2630_s6 + $0xe8] sm:$0xff]   ;;  %v2391_v62 = vld [vmem:[%s2630_s6 + $0x20] sm:$0xff]   ;;  %s2848_s14 = scalar_lea.vmem %s2944_s3, %s1949_s10 }
  0x3f   : > { %v2393_v63 = vld [vmem:[%s2630_s6 + $0xf0] sm:$0xff]   ;;  %v2392_v0 = vld [vmem:[%s2630_s6 + $0x28] sm:$0xff]   ;;  %v2394_v1 = vld [vmem:[%s2630_s6 + $0xf8] sm:$0xff]  }
  0x40   : > { %v2395_v2 = vld [vmem:[%s2630_s6 + $0x30] sm:$0xff]   ;;  %v2397_v3 = vld [vmem:[%s2630_s6 + $0x100] sm:$0xff]   ;;  %v2396_v4 = vld [vmem:[%s2630_s6 + $0x38] sm:$0xff]  }
  0x41   : > { %2248 = vmatmul.mubr.msk.bf16.vlgmr.msra.gmra.mrb[0].mxu0 %vm1008_vm0, %v2384_v55  ;;  %2300 = vmatmul.mubr.msk.bf16.vlgmr.msra.gmra.mrb[0].mxu1 %vm1008_vm0, %v2386_v57  ;;  %v2398_v5 = vld [vmem:[%s2630_s6 + $0x108] sm:$0xff]   ;;  %v2399_v6 = vld [vmem:[%s2630_s6 + $0x40] sm:$0xff]   ;;  %v2401_v7 = vld [vmem:[%s2630_s6 + $0x110] sm:$0xff]  }
  0x42   : > { %2251 = vmatprep.mubr.msk.bf16.mxu0 %vm1008_vm0, %v2387_v58  ;;  %2303 = vmatprep.mubr.msk.bf16.mxu1 %vm1008_vm0, %v2389_v59  ;;  %v2400_v8 = vld [vmem:[%s2630_s6 + $0x48] sm:$0xff]   ;;  %v2402_v9 = vld [vmem:[%s2630_s6 + $0x118] sm:$0xff]   ;;  %v2403_v10 = vld [vmem:[%s2630_s6 + $0x50] sm:$0xff]  }
  0x43   : > { %v2405_v11 = vld [vmem:[%s2630_s6 + $0x120] sm:$0xff]   ;;  %v2404_v12 = vld [vmem:[%s2630_s6 + $0x58] sm:$0xff]   ;;  %v2406_v13 = vld [vmem:[%s2630_s6 + $0x128] sm:$0xff]  }
  0x44   : > { %v2407_v14 = vld [vmem:[%s2630_s6 + $0x60] sm:$0xff]   ;;  %v2409_v15 = vld [vmem:[%s2630_s6 + $0x130] sm:$0xff]   ;;  %v2408_v16 = vld [vmem:[%s2630_s6 + $0x68] sm:$0xff]  }
  0x45   : > { %v2410_v17 = vld [vmem:[%s2630_s6 + $0x138] sm:$0xff]   ;;  %v2411_v18 = vld [vmem:[%s2630_s6 + $0x70] sm:$0xff]   ;;  %v2413_v19 = vld [vmem:[%s2630_s6 + $0x140] sm:$0xff]  }
  0x46   : > { %v2412_v20 = vld [vmem:[%s2630_s6 + $0x78] sm:$0xff]   ;;  %v2414_v21 = vld [vmem:[%s2630_s6 + $0x148] sm:$0xff]   ;;  %v2415_v22 = vld [vmem:[%s2630_s6 + $0x80] sm:$0xff]  }
  0x47   : > { %v2417_v23 = vld [vmem:[%s2630_s6 + $0x150] sm:$0xff]   ;;  %v2416_v24 = vld [vmem:[%s2630_s6 + $0x88] sm:$0xff]   ;;  %v2418_v25 = vld [vmem:[%s2630_s6 + $0x158] sm:$0xff]  }
  0x48   : > { %v2419_v26 = vld [vmem:[%s2630_s6 + $0x90] sm:$0xff]   ;;  %v2421_v27 = vld [vmem:[%s2630_s6 + $0x160] sm:$0xff]   ;;  %v2420_v28 = vld [vmem:[%s2630_s6 + $0x98] sm:$0xff]  }
  0x49   : > { %2252 = vmatmul.mubr.msk.bf16.gmra.mrb[4].mxu0 %vm1008_vm0, %v2388_v60  ;;  %2304 = vmatmul.mubr.msk.bf16.gmra.mrb[4].mxu1 %vm1008_vm0, %v2390_v61  ;;  %v2422_v29 = vld [vmem:[%s2630_s6 + $0x168] sm:$0xff]   ;;  %v2423_v30 = vld [vmem:[%s2630_s6 + $0xa0] sm:$0xff]   ;;  %v2425_v31 = vld [vmem:[%s2630_s6 + $0x170] sm:$0xff]  }
  0x4a   : > { %2255 = vmatprep.mubr.msk.bf16.mxu0 %vm1008_vm0, %v2391_v62  ;;  %2307 = vmatprep.mubr.msk.bf16.mxu1 %vm1008_vm0, %v2393_v63  ;;  %v2424_v32 = vld [vmem:[%s2630_s6 + $0xa8] sm:$0xff]   ;;  %v2426_v33 = vld [vmem:[%s2630_s6 + $0x178] sm:$0xff]   ;;  %v2427_v34 = vld [vmem:[%s2630_s6 + $0xb0] sm:$0xff]  }
  0x4b   : > { %v2429_v35 = vld [vmem:[%s2630_s6 + $0x180] sm:$0xff]   ;;  %v2428_v36 = vld [vmem:[%s2630_s6 + $0xb8] sm:$0xff]   ;;  %v2430_v37 = vld [vmem:[%s2630_s6 + $0x188] sm:$0xff]  }
  0x4c   : > { %v2431_v38 = vld [vmem:[%s2630_s6 + $0xc0] sm:$0xff]   ;;  %v2433_v39 = vld [vmem:[%s2630_s6 + $0x190] sm:$0xff]   ;;  %v2432_v40 = vld [vmem:[%s2630_s6 + $0xc8] sm:$0xff]  }
  0x4d   : > { %v2434_v41 = vld [vmem:[%s2630_s6 + $0x198] sm:$0xff]  }
  0x51   : > { %2256 = vmatmul.mubr.msk.bf16.gmra.mrb[8].mxu0 %vm1008_vm0, %v2392_v0  ;;  %2308 = vmatmul.mubr.msk.bf16.gmra.mrb[8].mxu1 %vm1008_vm0, %v2394_v1 }
  0x52   : > { %2259 = vmatprep.mubr.msk.bf16.mxu0 %vm1008_vm0, %v2395_v2  ;;  %2311 = vmatprep.mubr.msk.bf16.mxu1 %vm1008_vm0, %v2397_v3 }
  0x59   : > { %2260 = vmatmul.mubr.msk.bf16.gmra.mrb[12].mxu0 %vm1008_vm0, %v2396_v4  ;;  %2312 = vmatmul.mubr.msk.bf16.gmra.mrb[12].mxu1 %vm1008_vm0, %v2398_v5 }
  0x5a   : > { %2263 = vmatprep.mubr.msk.bf16.mxu0 %vm1008_vm0, %v2399_v6  ;;  %2315 = vmatprep.mubr.msk.bf16.mxu1 %vm1008_vm0, %v2401_v7 }
  0x61   : > { %2264 = vmatmul.mubr.msk.bf16.gmra.mrb[16].mxu0 %vm1008_vm0, %v2400_v8  ;;  %2316 = vmatmul.mubr.msk.bf16.gmra.mrb[16].mxu1 %vm1008_vm0, %v2402_v9 }
  0x62   : > { %2267 = vmatprep.mubr.msk.bf16.mxu0 %vm1008_vm0, %v2403_v10  ;;  %2319 = vmatprep.mubr.msk.bf16.mxu1 %vm1008_vm0, %v2405_v11 }
  0x69   : > { %2268 = vmatmul.mubr.msk.bf16.gmra.mrb[20].mxu0 %vm1008_vm0, %v2404_v12  ;;  %2320 = vmatmul.mubr.msk.bf16.gmra.mrb[20].mxu1 %vm1008_vm0, %v2406_v13 }
  0x6a   : > { %2271 = vmatprep.mubr.msk.bf16.mxu0 %vm1008_vm0, %v2407_v14  ;;  %2323 = vmatprep.mubr.msk.bf16.mxu1 %vm1008_vm0, %v2409_v15 }
  0x71   : > { %2272 = vmatmul.mubr.msk.bf16.gmra.mrb[24].mxu0 %vm1008_vm0, %v2408_v16  ;;  %2324 = vmatmul.mubr.msk.bf16.gmra.mrb[24].mxu1 %vm1008_vm0, %v2410_v17 }
  0x72   : > { %2275 = vmatprep.mubr.msk.bf16.mxu0 %vm1008_vm0, %v2411_v18  ;;  %2327 = vmatprep.mubr.msk.bf16.mxu1 %vm1008_vm0, %v2413_v19 }
  0x79   : > { %2276 = vmatmul.mubr.msk.bf16.gmra.mrb[28].mxu0 %vm1008_vm0, %v2412_v20  ;;  %2328 = vmatmul.mubr.msk.bf16.gmra.mrb[28].mxu1 %vm1008_vm0, %v2414_v21 }
  0x7a   : > { %2279 = vmatprep.mubr.msk.bf16.mxu0 %vm1008_vm0, %v2415_v22  ;;  %2331 = vmatprep.mubr.msk.bf16.mxu1 %vm1008_vm0, %v2417_v23 }
  0x81   : > { %2280 = vmatmul.mubr.msk.bf16.gmra.mrb[32].mxu0 %vm1008_vm0, %v2416_v24  ;;  %2332 = vmatmul.mubr.msk.bf16.gmra.mrb[32].mxu1 %vm1008_vm0, %v2418_v25 }
  0x82   : > { %2283 = vmatprep.mubr.msk.bf16.mxu0 %vm1008_vm0, %v2419_v26  ;;  %2335 = vmatprep.mubr.msk.bf16.mxu1 %vm1008_vm0, %v2421_v27 }
  0x89   : > { %2284 = vmatmul.mubr.msk.bf16.gmra.mrb[36].mxu0 %vm1008_vm0, %v2420_v28  ;;  %2336 = vmatmul.mubr.msk.bf16.gmra.mrb[36].mxu1 %vm1008_vm0, %v2422_v29 }
  0x8a   : > { %2287 = vmatprep.mubr.msk.bf16.mxu0 %vm1008_vm0, %v2423_v30  ;;  %2339 = vmatprep.mubr.msk.bf16.mxu1 %vm1008_vm0, %v2425_v31 }
  0x91   : > { %2288 = vmatmul.mubr.msk.bf16.gmra.mrb[40].mxu0 %vm1008_vm0, %v2424_v32  ;;  %2340 = vmatmul.mubr.msk.bf16.gmra.mrb[40].mxu1 %vm1008_vm0, %v2426_v33 }
  0x92   : > { %2291 = vmatprep.mubr.msk.bf16.mxu0 %vm1008_vm0, %v2427_v34  ;;  %2343 = vmatprep.mubr.msk.bf16.mxu1 %vm1008_vm0, %v2429_v35 }
  0x99   : > { %2292 = vmatmul.mubr.msk.bf16.gmra.mrb[44].mxu0 %vm1008_vm0, %v2428_v36  ;;  %2344 = vmatmul.mubr.msk.bf16.gmra.mrb[44].mxu1 %vm1008_vm0, %v2430_v37  ;;  %v2837_v37 = vld [vmem:[%s2943_s2] ss:$0 sm:$0xff] }
  0x9a   : > { %2295 = vmatprep.mubr.msk.bf16.mxu0 %vm1008_vm0, %v2431_v38  ;;  %2347 = vmatprep.mubr.msk.bf16.mxu1 %vm1008_vm0, %v2433_v39 }
  0xa1   : > { %2296 = vmatmul.mubr.msk.bf16.gmra.mrb[48].mxu0 %vm1008_vm0, %v2432_v40  ;;  %2348 = vmatmul.mubr.msk.bf16.gmra.mrb[48].mxu1 %vm1008_vm0, %v2434_v41 }
 0x114   : > { %v2736_v42 = vpop.f32.mrb[0].mxu0  ;;  %v2738_v43 = vpop.f32.mrb[0].mxu1 }
 0x115   : > { %v1199_v44 = vpop.f32.mrb[1].mxu0  ;;  %v1407_v45 = vpop.f32.mrb[1].mxu1 }
 0x116   : > { %v2740_v46 = vpop.f32.mrb[2].mxu0  ;;  %v2742_v47 = vpop.f32.mrb[2].mxu1 }
 0x117   : > { %v1202_v48 = vpop.f32.mrb[3].mxu0  ;;  %v1410_v49 = vpop.f32.mrb[3].mxu1 }
 0x11c   : > { %v2744_v50 = vpop.f32.mrb[4].mxu0  ;;  %v2746_v51 = vpop.f32.mrb[4].mxu1 }
 0x11d   : > { %v2748_v52 = vpop.f32.mrb[5].mxu0  ;;  %v2750_v53 = vpop.f32.mrb[5].mxu1 }
 0x11e   : > { %v2752_v54 = vpop.f32.mrb[6].mxu0  ;;  %v2754_v55 = vpop.f32.mrb[6].mxu1 }
 0x11f   : > { %v2756_v56 = vpop.f32.mrb[7].mxu0  ;;  %v2758_v57 = vpop.f32.mrb[7].mxu1 }
 0x124   : > { %v2760_v58 = vpop.f32.mrb[8].mxu0  ;;  %v2762_v59 = vpop.f32.mrb[8].mxu1 }
 0x125   : > { %v2764_v60 = vpop.f32.mrb[9].mxu0  ;;  %v2766_v61 = vpop.f32.mrb[9].mxu1 }
 0x126   : > { %v2768_v62 = vpop.f32.mrb[10].mxu0  ;;  %v2770_v63 = vpop.f32.mrb[10].mxu1 }
 0x127   : > { %v2772_v0 = vpop.f32.mrb[11].mxu0  ;;  %v2774_v1 = vpop.f32.mrb[11].mxu1 }
 0x12c   : > { %v2776_v2 = vpop.f32.mrb[12].mxu0  ;;  %v2778_v3 = vpop.f32.mrb[12].mxu1 }
 0x12d   : > { %v2780_v4 = vpop.f32.mrb[13].mxu0  ;;  %v2782_v5 = vpop.f32.mrb[13].mxu1 }
 0x12e   : > { %v2784_v6 = vpop.f32.mrb[14].mxu0  ;;  %v2786_v7 = vpop.f32.mrb[14].mxu1 }
 0x12f   : > { %v2788_v8 = vpop.f32.mrb[15].mxu0  ;;  %v2790_v9 = vpop.f32.mrb[15].mxu1 }
 0x134   : > { %v2792_v10 = vpop.f32.mrb[16].mxu0  ;;  %v2794_v11 = vpop.f32.mrb[16].mxu1 }
 0x135   : > { %v2796_v12 = vpop.f32.mrb[17].mxu0  ;;  %v2798_v13 = vpop.f32.mrb[17].mxu1 }
 0x136   : > { %v2800_v14 = vpop.f32.mrb[18].mxu0  ;;  %v2802_v15 = vpop.f32.mrb[18].mxu1 }
 0x137   : > { %v2804_v16 = vpop.f32.mrb[19].mxu0  ;;  %v2806_v17 = vpop.f32.mrb[19].mxu1 }
 0x13c   : > { %v2808_v18 = vpop.f32.mrb[20].mxu0  ;;  %v2810_v19 = vpop.f32.mrb[20].mxu1 }
 0x13d   : > { %2945 = vst [vmem:[#allocation3_spill] sm:$0xff] %v2810_v19  ;;  %v2812_v20 = vpop.f32.mrb[21].mxu0  ;;  %v2814_v21 = vpop.f32.mrb[21].mxu1 }
 0x13e   : > { %v2816_v22 = vpop.f32.mrb[22].mxu0  ;;  %v2818_v23 = vpop.f32.mrb[22].mxu1 }
 0x13f   : > { %2946 = vst [vmem:[#allocation4_spill] sm:$0xff] %v2816_v22  ;;  %2947 = vst [vmem:[#allocation5_spill] sm:$0xff] %v2818_v23  ;;  %v2820_v24 = vpop.f32.mrb[23].mxu0  ;;  %v2822_v25 = vpop.f32.mrb[23].mxu1 }
 0x144   : > { %v2273_v26 = vpop.f32.mrb[24].mxu0  ;;  %v2325_v27 = vpop.f32.mrb[24].mxu1 }
 0x145   : > { %v1614_v28 = vmax.f32 %v1199_v44, %v2273_v26  ;;  %v2826_v29 = vpop.f32.mrb[25].mxu0  ;;  %v2828_v30 = vpop.f32.mrb[25].mxu1 }
 0x146   : > { %v2274_v31 = vpop.f32.mrb[26].mxu0  ;;  %v2326_v32 = vpop.f32.mrb[26].mxu1 }
 0x147   : > { %v1615_v33 = vmax.f32 %v1614_v28, %v1407_v45  ;;  %v1617_v34 = vmax.f32 %v1202_v48, %v2274_v31  ;;  %v2830_v35 = vpop.f32.mrb[27].mxu0  ;;  %v2832_v36 = vpop.f32.mrb[27].mxu1 }
 0x148   : > { %2948 = vst [vmem:[#allocation6_spill] sm:$0xff] %v2832_v36 }
 0x149   : > { %v1616_v38 = vmax.f32 %v1615_v33, %v2325_v27  ;;  %v1618_v39 = vmax.f32 %v1617_v34, %v1410_v49 }
 0x14b   : > { %v1699_v40 = vadd.f32 %v2837_v37, %v1616_v38  ;;  %v1619_v41 = vmax.f32 %v1618_v39, %v2326_v32 }
 0x14c   : > { %v2277_v44 = vpop.f32.mrb[28].mxu0  ;;  %v2329_v26 = vpop.f32.mrb[28].mxu1 }
 0x14d   : > { %v1700_v45 = vadd.f32 %v2837_v37, %v1619_v41  ;;  %v1626_v48 = vmax.f32 %v2748_v52, %v2277_v44  ;;  %v1311_v28 = vpop.f32.mrb[29].mxu0  ;;  %v1519_v31 = vpop.f32.mrb[29].mxu1  ;;  %v1725_v19 = vmax.f32 %v1699_v40, 0.0 }
 0x14e   : > { %v1620_v23 = vmax.f32 %v2736_v42, %v1311_v28  ;;  %v2278_v36 = vpop.f32.mrb[30].mxu0  ;;  %v2330_v22 = vpop.f32.mrb[30].mxu1 }
 0x14f   : > { %v1726_v27 = vmax.f32 %v1700_v45, 0.0  ;;  %v1627_v49 = vmax.f32 %v1626_v48, %v2750_v53  ;;  %v1629_v33 = vmax.f32 %v2756_v56, %v2278_v36  ;;  %v1314_v32 = vpop.f32.mrb[31].mxu0  ;;  %v1522_v34 = vpop.f32.mrb[31].mxu1 }
 0x150   : > { %v1621_v52 = vmax.f32 %v1620_v23, %v2738_v43  ;;  %v1623_v42 = vmax.f32 %v2740_v46, %v1314_v32 }
 0x151   : > { %v2115_v38 = vpack.c.bf16 %v1726_v27, %v1725_v19  ;;  %v1628_v39 = vmax.f32 %v1627_v49, %v2329_v26  ;;  %v1630_v40 = vmax.f32 %v1629_v33, %v2758_v57 }
 0x152   : > { %v1622_v41 = vmax.f32 %v1621_v52, %v1519_v31  ;;  %v1624_v53 = vmax.f32 %v1623_v42, %v2742_v47 }
 0x153   : > { %2116 = vst [vmem:[%s2848_s14] sm:$0xff] %v2115_v38   ;;  %v1703_v56 = vadd.f32 %v2837_v37, %v1628_v39  ;;  %v1631_v36 = vmax.f32 %v1630_v40, %v2330_v22 }
 0x154   : > { %v1701_v44 = vadd.f32 %v2837_v37, %v1622_v41  ;;  %v1625_v45 = vmax.f32 %v1624_v53, %v1522_v34  ;;  %v2281_v48 = vpop.f32.mrb[32].mxu0  ;;  %v2333_v28 = vpop.f32.mrb[32].mxu1 }
 0x155   : > { %v1704_v43 = vadd.f32 %v2837_v37, %v1631_v36  ;;  %v1638_v46 = vmax.f32 %v2764_v60, %v2281_v48  ;;  %v1327_v19 = vpop.f32.mrb[33].mxu0  ;;  %v1535_v23 = vpop.f32.mrb[33].mxu1  ;;  %v1729_v27 = vmax.f32 %v1703_v56, 0.0 }
 0x156   : > { %v1702_v57 = vadd.f32 %v2837_v37, %v1625_v45  ;;  %v1632_v26 = vmax.f32 %v2744_v50, %v1327_v19  ;;  %v2282_v47 = vpop.f32.mrb[34].mxu0  ;;  %v2334_v31 = vpop.f32.mrb[34].mxu1  ;;  %v1727_v52 = vmax.f32 %v1701_v44, 0.0 }
 0x157   : > { %v1730_v22 = vmax.f32 %v1704_v43, 0.0  ;;  %v1639_v49 = vmax.f32 %v1638_v46, %v2766_v61  ;;  %v1641_v33 = vmax.f32 %v2772_v0, %v2282_v47  ;;  %v1330_v32 = vpop.f32.mrb[35].mxu0  ;;  %v1538_v34 = vpop.f32.mrb[35].mxu1 }
 0x158   : > { %v1728_v60 = vmax.f32 %v1702_v57, 0.0  ;;  %v1633_v42 = vmax.f32 %v1632_v26, %v2746_v51  ;;  %v1635_v38 = vmax.f32 %v2752_v54, %v1330_v32 }
 0x159   : > { %v2125_v39 = vpack.c.bf16 %v1730_v22, %v1729_v27  ;;  %v1640_v50 = vmax.f32 %v1639_v49, %v2333_v28  ;;  %v1642_v40 = vmax.f32 %v1641_v33, %v2774_v1 }
 0x15a   : > { %v2120_v41 = vpack.c.bf16 %v1728_v60, %v1727_v52  ;;  %v1634_v53 = vmax.f32 %v1633_v42, %v1535_v23  ;;  %v1636_v56 = vmax.f32 %v1635_v38, %v2754_v55 }
 0x15b   : > { %2178 = vst [vmem:[%s2848_s14 + $0x10] sm:$0xff] %v2125_v39   ;;  %v1707_v61 = vadd.f32 %v2837_v37, %v1640_v50  ;;  %v1643_v0 = vmax.f32 %v1642_v40, %v2334_v31 }
 0x15c   : > { %2177 = vst [vmem:[%s2848_s14 + $0x8] sm:$0xff] %v2120_v41   ;;  %v1705_v36 = vadd.f32 %v2837_v37, %v1634_v53  ;;  %v1637_v44 = vmax.f32 %v1636_v56, %v1538_v34  ;;  %v2285_v45 = vpop.f32.mrb[36].mxu0  ;;  %v2337_v51 = vpop.f32.mrb[36].mxu1 }
 0x15d   : > { %v1708_v54 = vadd.f32 %v2837_v37, %v1643_v0  ;;  %v1650_v48 = vmax.f32 %v2780_v4, %v2285_v45  ;;  %v1343_v28 = vpop.f32.mrb[37].mxu0  ;;  %v1551_v1 = vpop.f32.mrb[37].mxu1  ;;  %v1733_v23 = vmax.f32 %v1707_v61, 0.0 }
 0x15e   : > { %v1706_v43 = vadd.f32 %v2837_v37, %v1637_v44  ;;  %v1644_v55 = vmax.f32 %v2760_v58, %v1343_v28  ;;  %v2286_v46 = vpop.f32.mrb[38].mxu0  ;;  %v2338_v19 = vpop.f32.mrb[38].mxu1  ;;  %v1731_v22 = vmax.f32 %v1705_v36, 0.0 }
 0x15f   : > { %v1734_v57 = vmax.f32 %v1708_v54, 0.0  ;;  %v1651_v26 = vmax.f32 %v1650_v48, %v2782_v5  ;;  %v1653_v47 = vmax.f32 %v2788_v8, %v2286_v46  ;;  %v1346_v31 = vpop.f32.mrb[39].mxu0  ;;  %v1554_v27 = vpop.f32.mrb[39].mxu1 }
 0x160   : > { %v1732_v4 = vmax.f32 %v1706_v43, 0.0  ;;  %v1645_v49 = vmax.f32 %v1644_v55, %v2762_v59  ;;  %v1647_v33 = vmax.f32 %v2768_v62, %v1346_v31 }
 0x161   : > { %v2135_v32 = vpack.c.bf16 %v1734_v57, %v1733_v23  ;;  %v1652_v58 = vmax.f32 %v1651_v26, %v2337_v51  ;;  %v1654_v34 = vmax.f32 %v1653_v47, %v2790_v9 }
 0x162   : > { %v2130_v52 = vpack.c.bf16 %v1732_v4, %v1731_v22  ;;  %v1646_v60 = vmax.f32 %v1645_v49, %v1551_v1  ;;  %v1648_v42 = vmax.f32 %v1647_v33, %v2770_v63 }
 0x163   : > { %2180 = vst [vmem:[%s2848_s14 + $0x20] sm:$0xff] %v2135_v32   ;;  %v1711_v5 = vadd.f32 %v2837_v37, %v1652_v58  ;;  %v1655_v8 = vmax.f32 %v1654_v34, %v2338_v19 }
 0x164   : > { %2179 = vst [vmem:[%s2848_s14 + $0x18] sm:$0xff] %v2130_v52   ;;  %v1709_v38 = vadd.f32 %v2837_v37, %v1646_v60  ;;  %v1649_v39 = vmax.f32 %v1648_v42, %v1554_v27  ;;  %v2289_v50 = vpop.f32.mrb[40].mxu0  ;;  %v2341_v59 = vpop.f32.mrb[40].mxu1 }
 0x165   : > { %v1712_v62 = vadd.f32 %v2837_v37, %v1655_v8  ;;  %v1662_v40 = vmax.f32 %v2796_v12, %v2289_v50  ;;  %v1359_v41 = vpop.f32.mrb[41].mxu0  ;;  %v1567_v9 = vpop.f32.mrb[41].mxu1  ;;  %v1737_v0 = vmax.f32 %v1711_v5, 0.0 }
 0x166   : > { %v1710_v53 = vadd.f32 %v2837_v37, %v1649_v39  ;;  %v1656_v63 = vmax.f32 %v2776_v2, %v1359_v41  ;;  %v2290_v56 = vpop.f32.mrb[42].mxu0  ;;  %v2342_v61 = vpop.f32.mrb[42].mxu1  ;;  %v1735_v48 = vmax.f32 %v1709_v38, 0.0 }
 0x167   : > { %v1738_v36 = vmax.f32 %v1712_v62, 0.0  ;;  %v1663_v44 = vmax.f32 %v1662_v40, %v2798_v13  ;;  %v1665_v45 = vmax.f32 %v2804_v16, %v2290_v56  ;;  %v1362_v51 = vpop.f32.mrb[43].mxu0  ;;  %v1570_v54 = vpop.f32.mrb[43].mxu1 }
 0x168   : > { %v1736_v12 = vmax.f32 %v1710_v53, 0.0  ;;  %v1657_v28 = vmax.f32 %v1656_v63, %v2778_v3  ;;  %v1659_v1 = vmax.f32 %v2784_v6, %v1362_v51 }
 0x169   : > { %v2145_v43 = vpack.c.bf16 %v1738_v36, %v1737_v0  ;;  %v1664_v2 = vmax.f32 %v1663_v44, %v2341_v59  ;;  %v1666_v55 = vmax.f32 %v1665_v45, %v2806_v17 }
 0x16a   : > { %v2140_v46 = vpack.c.bf16 %v1736_v12, %v1735_v48  ;;  %v1658_v19 = vmax.f32 %v1657_v28, %v1567_v9  ;;  %v1660_v23 = vmax.f32 %v1659_v1, %v2786_v7  ;;  %v2949_v28 = vld [vmem:[#allocation3_spill] sm:$0xff] }
 0x16b   : > { %2182 = vst [vmem:[%s2848_s14 + $0x30] sm:$0xff] %v2145_v43   ;;  %v1715_v13 = vadd.f32 %v2837_v37, %v1664_v2  ;;  %v1667_v16 = vmax.f32 %v1666_v55, %v2342_v61  ;;  %v2950_v43 = vld [vmem:[#allocation4_spill] sm:$0xff] }
 0x16c   : > { %2181 = vst [vmem:[%s2848_s14 + $0x28] sm:$0xff] %v2140_v46   ;;  %v1713_v57 = vadd.f32 %v2837_v37, %v1658_v19  ;;  %v1661_v26 = vmax.f32 %v1660_v23, %v1570_v54  ;;  %v2293_v47 = vpop.f32.mrb[44].mxu0  ;;  %v2345_v3 = vpop.f32.mrb[44].mxu1  ;;  %v2951_v46 = vld [vmem:[#allocation6_spill] sm:$0xff] }
 0x16d   : > { %v1716_v6 = vadd.f32 %v2837_v37, %v1667_v16  ;;  %v1674_v31 = vmax.f32 %v2812_v20, %v2293_v47  ;;  %v1375_v27 = vpop.f32.mrb[45].mxu0  ;;  %v1583_v17 = vpop.f32.mrb[45].mxu1  ;;  %v1741_v33 = vmax.f32 %v1715_v13, 0.0  ;;  %v2952_v16 = vld [vmem:[#allocation5_spill] sm:$0xff] }
 0x16e   : > { %v1714_v22 = vadd.f32 %v2837_v37, %v1661_v26  ;;  %v1668_v7 = vmax.f32 %v2792_v10, %v1375_v27  ;;  %v2294_v4 = vpop.f32.mrb[46].mxu0  ;;  %v2346_v49 = vpop.f32.mrb[46].mxu1  ;;  %v1739_v42 = vmax.f32 %v1713_v57, 0.0 }
 0x16f   : > { %v1742_v32 = vmax.f32 %v1716_v6, 0.0  ;;  %v1675_v58 = vmax.f32 %v1674_v31, %v2814_v21  ;;  %v1677_v34 = vmax.f32 %v2820_v24, %v2294_v4  ;;  %v1378_v52 = vpop.f32.mrb[47].mxu0  ;;  %v1586_v60 = vpop.f32.mrb[47].mxu1 }
 0x170   : > { %v1740_v20 = vmax.f32 %v1714_v22, 0.0  ;;  %v1669_v5 = vmax.f32 %v1668_v7, %v2794_v11  ;;  %v1671_v8 = vmax.f32 %v2800_v14, %v1378_v52 }
 0x171   : > { %v2155_v38 = vpack.c.bf16 %v1742_v32, %v1741_v33  ;;  %v1676_v10 = vmax.f32 %v1675_v58, %v2345_v3  ;;  %v1678_v39 = vmax.f32 %v1677_v34, %v2822_v25 }
 0x172   : > { %v2150_v50 = vpack.c.bf16 %v1740_v20, %v1739_v42  ;;  %v1670_v59 = vmax.f32 %v1669_v5, %v1583_v17  ;;  %v1672_v62 = vmax.f32 %v1671_v8, %v2802_v15 }
 0x173   : > { %2184 = vst [vmem:[%s2848_s14 + $0x40] sm:$0xff] %v2155_v38   ;;  %v1719_v21 = vadd.f32 %v2837_v37, %v1676_v10  ;;  %v1679_v24 = vmax.f32 %v1678_v39, %v2346_v49 }
 0x174   : > { %2183 = vst [vmem:[%s2848_s14 + $0x38] sm:$0xff] %v2150_v50   ;;  %v1717_v40 = vadd.f32 %v2837_v37, %v1670_v59  ;;  %v1673_v41 = vmax.f32 %v1672_v62, %v1586_v60  ;;  %v2297_v9 = vpop.f32.mrb[48].mxu0  ;;  %v2349_v11 = vpop.f32.mrb[48].mxu1 }
 0x175   : > { %v1720_v14 = vadd.f32 %v2837_v37, %v1679_v24  ;;  %v1686_v53 = vmax.f32 %v2826_v29, %v2297_v9  ;;  %v1391_v63 = vpop.f32.mrb[49].mxu0  ;;  %v1599_v25 = vpop.f32.mrb[49].mxu1  ;;  %v1745_v36 = vmax.f32 %v1719_v21, 0.0 }
 0x176   : > { %v1718_v56 = vadd.f32 %v2837_v37, %v1673_v41  ;;  %v1680_v15 = vmax.f32 %v2808_v18, %v1391_v63  ;;  %v2298_v61 = vpop.f32.mrb[50].mxu0  ;;  %v2350_v0 = vpop.f32.mrb[50].mxu1  ;;  %v1743_v12 = vmax.f32 %v1717_v40, 0.0 }
 0x177   : > { %v1746_v44 = vmax.f32 %v1720_v14, 0.0  ;;  %v1687_v45 = vmax.f32 %v1686_v53, %v2828_v30  ;;  %v1689_v51 = vmax.f32 %v2830_v35, %v2298_v61  ;;  %v1394_v54 = vpop.f32.mrb[51].mxu0  ;;  %v1602_v48 = vpop.f32.mrb[51].mxu1 }
 0x178   : > { %v1744_v29 = vmax.f32 %v1718_v56, 0.0  ;;  %v1681_v1 = vmax.f32 %v1680_v15, %v2949_v28  ;;  %v1683_v2 = vmax.f32 %v2950_v43, %v1394_v54 }
 0x179   : > { %v2165_v55 = vpack.c.bf16 %v1746_v44, %v1745_v36  ;;  %v1688_v18 = vmax.f32 %v1687_v45, %v2349_v11  ;;  %v1690_v19 = vmax.f32 %v1689_v51, %v2951_v46 }
 0x17a   : > { %v2160_v23 = vpack.c.bf16 %v1744_v29, %v1743_v12  ;;  %v1682_v13 = vmax.f32 %v1681_v1, %v1599_v25  ;;  %v1684_v30 = vmax.f32 %v1683_v2, %v2952_v16 }
 0x17b   : > { %2186 = vst [vmem:[%s2848_s14 + $0x50] sm:$0xff] %v2165_v55   ;;  %v1723_v35 = vadd.f32 %v2837_v37, %v1688_v18  ;;  %v1691_v57 = vmax.f32 %v1690_v19, %v2350_v0 }
 0x17c   : > { %2185 = vst [vmem:[%s2848_s14 + $0x48] sm:$0xff] %v2160_v23   ;;  %v1721_v26 = vadd.f32 %v2837_v37, %v1682_v13  ;;  %v1685_v47 = vmax.f32 %v1684_v30, %v1602_v48 }
 0x17d   : > { %v1724_v3 = vadd.f32 %v2837_v37, %v1691_v57  ;;  %v1749_v31 = vmax.f32 %v1723_v35, 0.0 }
 0x17e   : > { %v1722_v6 = vadd.f32 %v2837_v37, %v1685_v47  ;;  %v1747_v17 = vmax.f32 %v1721_v26, 0.0 }
 0x17f   : > { %v1750_v27 = vmax.f32 %v1724_v3, 0.0 }
 0x180   : > { %v1748_v22 = vmax.f32 %v1722_v6, 0.0 }
 0x181   : > { %v2175_v7 = vpack.c.bf16 %v1750_v27, %v1749_v31 }
 0x182   : > { %v2170_v4 = vpack.c.bf16 %v1748_v22, %v1747_v17 }
 0x183   : > { %2188 = vst [vmem:[%s2848_s14 + $0x60] sm:$0xff] %v2175_v7  }
 0x184   : > { %2187 = vst [vmem:[%s2848_s14 + $0x58] sm:$0xff] %v2170_v4  }
 0x185 PF: > { %p10_p9 = scmp.ge.s32.totalorder %s2496_s16, 4   ;;  %s2953_s12 = smov %s2453_s13 }
 0x186   : > { %s2954_s13 = smov %s2505_s19  ;;  %s2955_s14 = smov %s2496_s16 }
 0x187   :  { %12 = sbr.rel (!%p10_p9) target bundleno = 2 (0x2), region = 108 }

// kernel: net_forward.4
= control target key start
LH: loop header
LB: loop body
LE: loop exit
PB: predicated region body
PF: predicated region fallthrough
CT: control target
= control target key end

     0   :  { %s1328_s12 = smov 0   ;;  %s1330_s13 = smov 0   ;;  %s1585_s0 = inlined_call_operand.vmem [shape: bf16[4,128,256], index: 0, kind: input, shape index: {}]   ;;  %s1586_s1 = inlined_call_operand.vmem [shape: bf16[256,128], index: 1, kind: input, shape index: {}]   ;;  %s1587_s2 = inlined_call_operand.vmem [shape: f32[1,128], index: 2, kind: input, shape index: {}]   ;;  %s1588_s3 = inlined_call_operand.vmem [shape: bf16[128,128], index: 3, kind: output, shape index: {}]  }
   0x1   :  { %s1332_s14 = smov 0  }
   0x2 LB: > { %s964_s15 = sadd.s32 4294967295, %s1306_s14   ;;  %s1345_s16 = sadd.s32 1, %s1306_s14   ;;  %s1306_s14 = sphi %s1332_s14, %s1591_s14   ;;  %s1302_s13 = sphi %s1330_s13, %s1590_s13   ;;  %s1298_s12 = sphi %s1328_s12, %s1589_s12  }
   0x3   : > { %s17_s17 = ssub.s32 %s1306_s14, %s1345_s16  ;;  %s20_s18 = sadd.s32 1, %s1302_s13 }
   0x4   : > { %p18_p0 = scmp.eq.s32.totalorder %s17_s17, 0  ;;  %p27_p1 = scmp.ne.s32.totalorder %s1302_s13, %s1298_s12 }
   0x5   : > { %p28_p2 = scmp.eq.s32.totalorder %s1306_s14, 0  ;;  %p967_p4 = scmp.ge.s32.totalorder %s1306_s14, 2 }
   0x6   : > { %s1354_s19 = scalar_select %p18_p0, %s1302_s13, %s20_s18  }
   0x7   : > { %p29_p3 = por %p28_p2, %p27_p1  ;;  %127 = sbr.rel (%p967_p4) target bundleno = 34 (0x22), region = 24 }
   0xe   : > { %130 = sbr.rel (!%p29_p3) target bundleno = 34 (0x22), region = 28  ;;  %s132_s20 = sand.u32 (%p29_p3), 1, %s1302_s13  }
   0xf   : > { %s1036_s21 = sshll.u32 (%p29_p3), %s1306_s14, 6  ;;  %s968_s22 = sshll.u32 (%p29_p3), %s132_s20, 8 }
  0x10   : > { %s1362_s25 = scalar_lea.vmem (%p29_p3), %s1585_s0, %s1036_s21  ;;  %s1367_s26 = scalar_lea.vmem (%p29_p3), [#allocation2], %s968_s22 }
  0x11   : > { %v228_v0 = vld [vmem:[%s1362_s25] sm:$0xff] (%p29_p3)  ;;  %v230_v1 = vld [vmem:[%s1362_s25 + $0x8] sm:$0xff] (%p29_p3)  ;;  %v232_v2 = vld [vmem:[%s1362_s25 + $0x10] sm:$0xff] (%p29_p3) }
  0x12   : > { %229 = vst [vmem:[%s1367_s26] sm:$0xff] (%p29_p3), %v228_v0  ;;  %231 = vst [vmem:[%s1367_s26 + $0x8] sm:$0xff] (%p29_p3), %v230_v1  ;;  %v234_v3 = vld [vmem:[%s1362_s25 + $0x18] sm:$0xff] (%p29_p3)  ;;  %v236_v4 = vld [vmem:[%s1362_s25 + $0x20] sm:$0xff] (%p29_p3) }
  0x13   : > { %233 = vst [vmem:[%s1367_s26 + $0x10] sm:$0xff] (%p29_p3), %v232_v2  ;;  %v238_v5 = vld [vmem:[%s1362_s25 + $0x28] sm:$0xff] (%p29_p3)  ;;  %235 = vst [vmem:[%s1367_s26 + $0x18] sm:$0xff] (%p29_p3), %v234_v3  ;;  %v240_v6 = vld [vmem:[%s1362_s25 + $0x30] sm:$0xff] (%p29_p3) }
  0x14   : > { %237 = vst [vmem:[%s1367_s26 + $0x20] sm:$0xff] (%p29_p3), %v236_v4  ;;  %239 = vst [vmem:[%s1367_s26 + $0x28] sm:$0xff] (%p29_p3), %v238_v5  ;;  %v242_v7 = vld [vmem:[%s1362_s25 + $0x38] sm:$0xff] (%p29_p3)  ;;  %v244_v8 = vld [vmem:[%s1362_s25 + $0x80] sm:$0xff] (%p29_p3) }
  0x15   : > { %241 = vst [vmem:[%s1367_s26 + $0x30] sm:$0xff] %v240_v6  ;;  %243 = vst [vmem:[%s1367_s26 + $0x38] sm:$0xff] %v242_v7  ;;  %v246_v9 = vld [vmem:[%s1362_s25 + $0x88] sm:$0xff]  ;;  %v248_v10 = vld [vmem:[%s1362_s25 + $0x90] sm:$0xff] }
  0x16   : > { %245 = vst [vmem:[%s1367_s26 + $0x40] sm:$0xff] %v244_v8  ;;  %v250_v11 = vld [vmem:[%s1362_s25 + $0x98] sm:$0xff]  ;;  %247 = vst [vmem:[%s1367_s26 + $0x48] sm:$0xff] %v246_v9  ;;  %v252_v12 = vld [vmem:[%s1362_s25 + $0xa0] sm:$0xff] }
  0x17   : > { %249 = vst [vmem:[%s1367_s26 + $0x50] sm:$0xff] %v248_v10  ;;  %251 = vst [vmem:[%s1367_s26 + $0x58] sm:$0xff] %v250_v11  ;;  %v254_v13 = vld [vmem:[%s1362_s25 + $0xa8] sm:$0xff]  ;;  %v256_v14 = vld [vmem:[%s1362_s25 + $0xb0] sm:$0xff] }
  0x18   : > { %253 = vst [vmem:[%s1367_s26 + $0x60] sm:$0xff] %v252_v12  ;;  %255 = vst [vmem:[%s1367_s26 + $0x68] sm:$0xff] %v254_v13  ;;  %v258_v15 = vld [vmem:[%s1362_s25 + $0xb8] sm:$0xff]  ;;  %v260_v16 = vld [vmem:[%s1362_s25 + $0x100] sm:$0xff] }
  0x19   : > { %257 = vst [vmem:[%s1367_s26 + $0x70] sm:$0xff] %v256_v14  ;;  %v262_v17 = vld [vmem:[%s1362_s25 + $0x108] sm:$0xff]  ;;  %259 = vst [vmem:[%s1367_s26 + $0x78] sm:$0xff] %v258_v15  ;;  %v264_v18 = vld [vmem:[%s1362_s25 + $0x110] sm:$0xff] }
  0x1a   : > { %261 = vst [vmem:[%s1367_s26 + $0x80] sm:$0xff] %v260_v16  ;;  %263 = vst [vmem:[%s1367_s26 + $0x88] sm:$0xff] %v262_v17  ;;  %v266_v19 = vld [vmem:[%s1362_s25 + $0x118] sm:$0xff]  ;;  %v268_v20 = vld [vmem:[%s1362_s25 + $0x120] sm:$0xff] }
  0x1b   : > { %265 = vst [vmem:[%s1367_s26 + $0x90] sm:$0xff] %v264_v18  ;;  %267 = vst [vmem:[%s1367_s26 + $0x98] sm:$0xff] %v266_v19  ;;  %v270_v21 = vld [vmem:[%s1362_s25 + $0x128] sm:$0xff]  ;;  %v272_v22 = vld [vmem:[%s1362_s25 + $0x130] sm:$0xff] }
  0x1c   : > { %269 = vst [vmem:[%s1367_s26 + $0xa0] sm:$0xff] %v268_v20  ;;  %v274_v23 = vld [vmem:[%s1362_s25 + $0x138] sm:$0xff]  ;;  %271 = vst [vmem:[%s1367_s26 + $0xa8] sm:$0xff] %v270_v21  ;;  %v276_v24 = vld [vmem:[%s1362_s25 + $0x180] sm:$0xff] }
  0x1d   : > { %273 = vst [vmem:[%s1367_s26 + $0xb0] sm:$0xff] %v272_v22  ;;  %275 = vst [vmem:[%s1367_s26 + $0xb8] sm:$0xff] %v274_v23  ;;  %v278_v25 = vld [vmem:[%s1362_s25 + $0x188] sm:$0xff]  ;;  %v280_v26 = vld [vmem:[%s1362_s25 + $0x190] sm:$0xff] }
  0x1e   : > { %277 = vst [vmem:[%s1367_s26 + $0xc0] sm:$0xff] %v276_v24  ;;  %279 = vst [vmem:[%s1367_s26 + $0xc8] sm:$0xff] %v278_v25  ;;  %v282_v27 = vld [vmem:[%s1362_s25 + $0x198] sm:$0xff]  ;;  %v284_v28 = vld [vmem:[%s1362_s25 + $0x1a0] sm:$0xff] }
  0x1f   : > { %281 = vst [vmem:[%s1367_s26 + $0xd0] sm:$0xff] %v280_v26  ;;  %v286_v29 = vld [vmem:[%s1362_s25 + $0x1a8] sm:$0xff]  ;;  %283 = vst [vmem:[%s1367_s26 + $0xd8] sm:$0xff] %v282_v27  ;;  %v288_v30 = vld [vmem:[%s1362_s25 + $0x1b0] sm:$0xff] }
  0x20   : > { %285 = vst [vmem:[%s1367_s26 + $0xe0] sm:$0xff] %v284_v28  ;;  %287 = vst [vmem:[%s1367_s26 + $0xe8] sm:$0xff] %v286_v29  ;;  %v290_v31 = vld [vmem:[%s1362_s25 + $0x1b8] sm:$0xff] }
  0x21   : > { %289 = vst [vmem:[%s1367_s26 + $0xf0] sm:$0xff] %v288_v30  ;;  %291 = vst [vmem:[%s1367_s26 + $0xf8] sm:$0xff] %v290_v31 }
  0x22 PF: > { %p972_p5 = scmp.ge.s32.totalorder %s1306_s14, 1  ;;  %p296_p6 = scmp.lt.s32.totalorder %s1306_s14, 3 }
  0x24   : > { %p297_p7 = pnand %p972_p5, %p296_p6 }
  0x25   : > { %v1220_v32 = vld [vmem:[%s1586_s1 + $0x40] sm:$0xff] (!%p297_p7)   ;;  %v1222_v34 = vld [vmem:[%s1586_s1 + $0x48] sm:$0xff] (!%p297_p7)   ;;  %v1224_v36 = vld [vmem:[%s1586_s1 + $0x50] sm:$0xff] (!%p297_p7)   ;;  %s303_s20 = sand.u32 (!%p297_p7), 1, %s1298_s12   ;;  %s974_s18 = sshll.u32 (!%p297_p7), %s964_s15, 3 }
  0x26   : > { %300 = sbr.rel (%p297_p7) target bundleno = 356 (0x164), region = 66  ;;  %v1221_v33 = vld [vmem:[%s1586_s1] sm:$0xff] (!%p297_p7)   ;;  %1068 = vmatprep.subr.bf16.mxu0 (!%p297_p7), %v1220_v32  ;;  %1180 = vmatprep.subr.bf16.mxu1 (!%p297_p7), %v1220_v32  ;;  %v1223_v35 = vld [vmem:[%s1586_s1 + $0x8] sm:$0xff] (!%p297_p7)   ;;  %v1225_v37 = vld [vmem:[%s1586_s1 + $0x10] sm:$0xff] (!%p297_p7)   ;;  %s973_s23 = sshll.u32 (!%p297_p7), %s303_s20, 8 }
  0x27   : > { %1069 = vmatpush3.bf16.msra.mxu0 (!%p297_p7), %v1221_v33  ;;  %1188 = vmatpush3.bf16.msra.mxu1 (!%p297_p7), %v1221_v33  ;;  %v1226_v38 = vld [vmem:[%s1586_s1 + $0x58] sm:$0xff] (!%p297_p7)   ;;  %v1228_v40 = vld [vmem:[%s1586_s1 + $0x60] sm:$0xff] (!%p297_p7)   ;;  %v1230_v42 = vld [vmem:[%s1586_s1 + $0x68] sm:$0xff] (!%p297_p7)   ;;  %s1466_s29 = scalar_lea.vmem (!%p297_p7), [#allocation2], %s973_s23  ;;  %p328_p8 = scmp.lt.s32.totalorder (!%p297_p7), %s974_s18, 15 }
  0x28   : > { %1070 = vmatprep.subr.bf16.mxu0 (!%p297_p7), %v1222_v34  ;;  %1181 = vmatprep.subr.bf16.mxu1 (!%p297_p7), %v1222_v34  ;;  %v1227_v39 = vld [vmem:[%s1586_s1 + $0x18] sm:$0xff] (!%p297_p7)   ;;  %v1229_v41 = vld [vmem:[%s1586_s1 + $0x20] sm:$0xff] (!%p297_p7)   ;;  %v1231_v45 = vld [vmem:[%s1586_s1 + $0x28] sm:$0xff] (!%p297_p7)  }
  0x29   : > { %v1238_v43 = vld [vmem:[%s1466_s29 + $0x4] ss:$8 sps:$4 sm:$0xff] (!%p297_p7)   ;;  %v1232_v46 = vld [vmem:[%s1586_s1 + $0x70] sm:$0xff] (!%p297_p7)   ;;  %v1234_v48 = vld [vmem:[%s1586_s1 + $0x78] sm:$0xff] (!%p297_p7)  }
  0x2a   : > { %v1241_v44 = vld [vmem:[%s1466_s29 + $0x84] ss:$8 sps:$4 sm:$0xff] (!%p297_p7)   ;;  %686 = vmatprep.mubr.bf16.mxu0 (!%p297_p7), %v1238_v43  ;;  %v1233_v47 = vld [vmem:[%s1586_s1 + $0x30] sm:$0xff] (!%p297_p7)   ;;  %v1235_v49 = vld [vmem:[%s1586_s1 + $0x38] sm:$0xff] (!%p297_p7)  }
  0x2b   : > { %1071 = vmatpush3.bf16.msra.mxu0 (!%p297_p7), %v1223_v35  ;;  %1189 = vmatpush3.bf16.msra.mxu1 (!%p297_p7), %v1223_v35  ;;  %v1236_v50 = vld [vmem:[%s1466_s29] ss:$8 sps:$4 sm:$0xff] (!%p297_p7)   ;;  %v1242_v52 = vld [vmem:[%s1466_s29 + $0x14] ss:$8 sps:$4 sm:$0xff] (!%p297_p7)   ;;  %v1244_v54 = vld [vmem:[%s1466_s29 + $0x10] ss:$8 sps:$4 sm:$0xff] (!%p297_p7)  }
  0x2c   : > { %1072 = vmatprep.subr.bf16.mxu0 (!%p297_p7), %v1224_v36  ;;  %1182 = vmatprep.subr.bf16.mxu1 (!%p297_p7), %v1224_v36  ;;  %v1239_v51 = vld [vmem:[%s1466_s29 + $0x80] ss:$8 sps:$4 sm:$0xff] (!%p297_p7)   ;;  %v1245_v53 = vld [vmem:[%s1466_s29 + $0x94] ss:$8 sps:$4 sm:$0xff] (!%p297_p7)   ;;  %v1247_v55 = vld [vmem:[%s1466_s29 + $0x90] ss:$8 sps:$4 sm:$0xff] (!%p297_p7)  }
  0x2d   : > { %750 = vmatprep.mubr.bf16.mxu1 %v1241_v44  ;;  %v1248_v56 = vld [vmem:[%s1466_s29 + $0x24] ss:$8 sps:$4 sm:$0xff]   ;;  %v1250_v58 = vld [vmem:[%s1466_s29 + $0x20] ss:$8 sps:$4 sm:$0xff]   ;;  %v1254_v60 = vld [vmem:[%s1466_s29 + $0x34] ss:$8 sps:$4 sm:$0xff]  }
  0x2e   : > { %v1251_v57 = vld [vmem:[%s1466_s29 + $0xa4] ss:$8 sps:$4 sm:$0xff]   ;;  %v1253_v59 = vld [vmem:[%s1466_s29 + $0xa0] ss:$8 sps:$4 sm:$0xff]   ;;  %v1257_v61 = vld [vmem:[%s1466_s29 + $0xb4] ss:$8 sps:$4 sm:$0xff]  }
  0x2f   : > { %1073 = vmatpush3.bf16.msra.mxu0 %v1225_v37  ;;  %1190 = vmatpush3.bf16.msra.mxu1 %v1225_v37  ;;  %v1256_v62 = vld [vmem:[%s1466_s29 + $0x30] ss:$8 sps:$4 sm:$0xff]   ;;  %v1260_v0 = vld [vmem:[%s1466_s29 + $0x44] ss:$8 sps:$4 sm:$0xff]   ;;  %v1262_v2 = vld [vmem:[%s1466_s29 + $0x40] ss:$8 sps:$4 sm:$0xff]  }
  0x30   : > { %1074 = vmatprep.subr.bf16.mxu0 %v1226_v38  ;;  %1183 = vmatprep.subr.bf16.mxu1 %v1226_v38  ;;  %v1259_v63 = vld [vmem:[%s1466_s29 + $0xb0] ss:$8 sps:$4 sm:$0xff]   ;;  %v1263_v1 = vld [vmem:[%s1466_s29 + $0xc4] ss:$8 sps:$4 sm:$0xff]   ;;  %v1265_v3 = vld [vmem:[%s1466_s29 + $0xc0] ss:$8 sps:$4 sm:$0xff]  }
  0x31   : > { %v1266_v4 = vld [vmem:[%s1466_s29 + $0x54] ss:$8 sps:$4 sm:$0xff]   ;;  %v1268_v6 = vld [vmem:[%s1466_s29 + $0x50] ss:$8 sps:$4 sm:$0xff]   ;;  %v1272_v8 = vld [vmem:[%s1466_s29 + $0x64] ss:$8 sps:$4 sm:$0xff]  }
  0x32   : > { %v1269_v5 = vld [vmem:[%s1466_s29 + $0xd4] ss:$8 sps:$4 sm:$0xff]   ;;  %v1271_v7 = vld [vmem:[%s1466_s29 + $0xd0] ss:$8 sps:$4 sm:$0xff]   ;;  %v1275_v9 = vld [vmem:[%s1466_s29 + $0xe4] ss:$8 sps:$4 sm:$0xff]  }
  0x33   : > { %1075 = vmatpush3.bf16.msra.mxu0 %v1227_v39  ;;  %1191 = vmatpush3.bf16.msra.mxu1 %v1227_v39  ;;  %v1274_v10 = vld [vmem:[%s1466_s29 + $0x60] ss:$8 sps:$4 sm:$0xff]   ;;  %v1278_v12 = vld [vmem:[%s1466_s29 + $0x74] ss:$8 sps:$4 sm:$0xff]   ;;  %v1280_v14 = vld [vmem:[%s1466_s29 + $0x70] ss:$8 sps:$4 sm:$0xff]  }
  0x34   : > { %1076 = vmatprep.subr.bf16.mxu0 %v1228_v40  ;;  %1184 = vmatprep.subr.bf16.mxu1 %v1228_v40  ;;  %v1277_v11 = vld [vmem:[%s1466_s29 + $0xe0] ss:$8 sps:$4 sm:$0xff]   ;;  %v1281_v13 = vld [vmem:[%s1466_s29 + $0xf4] ss:$8 sps:$4 sm:$0xff]   ;;  %v1283_v15 = vld [vmem:[%s1466_s29 + $0xf0] ss:$8 sps:$4 sm:$0xff]  }
  0x35   : > { %s1593_s18 = smov (!%p328_p8, %s974_s18), 15 }
  0x36   : > { %s975_s14 = sshll.u32 %s1593_s18, 2 }
  0x37   : > { %1077 = vmatpush3.bf16.msra.mxu0 %v1229_v41  ;;  %1192 = vmatpush3.bf16.msra.mxu1 %v1229_v41  ;;  %s1554_s23 = scalar_lea.vmem %s1588_s3, %s975_s14 }
  0x38   : > { %1078 = vmatprep.subr.bf16.mxu0 %v1230_v42  ;;  %1185 = vmatprep.subr.bf16.mxu1 %v1230_v42 }
  0x3b   : > { %1079 = vmatpush3.bf16.msra.mxu0 %v1231_v45  ;;  %1193 = vmatpush3.bf16.msra.mxu1 %v1231_v45 }
  0x3c   : > { %1080 = vmatprep.subr.bf16.mxu0 %v1232_v46  ;;  %1186 = vmatprep.subr.bf16.mxu1 %v1232_v46 }
  0x3f   : > { %1081 = vmatpush3.bf16.msra.mxu0 %v1233_v47  ;;  %1194 = vmatpush3.bf16.msra.mxu1 %v1233_v47 }
  0x40   : > { %1082 = vmatprep.subr.bf16.mxu0 %v1234_v48  ;;  %1187 = vmatprep.subr.bf16.mxu1 %v1234_v48 }
  0x43   : > { %1083 = vmatpush3.bf16.msra.mxu0 %v1235_v49  ;;  %1195 = vmatpush3.bf16.msra.mxu1 %v1235_v49 }
  0x46   : > { %687 = vmatmul.mubr.bf16.vlgmr.msra.gmra.mrb[0].mxu0 %v1236_v50  ;;  %751 = vmatmul.mubr.bf16.vlgmr.msra.gmra.mrb[0].mxu1 %v1239_v51 }
  0x47   : > { %694 = vmatprep.mubr.bf16.mxu0 %v1242_v52  ;;  %758 = vmatprep.mubr.bf16.mxu1 %v1245_v53 }
  0x4e   : > { %695 = vmatmul.mubr.bf16.gmra.mrb[4].mxu0 %v1244_v54  ;;  %759 = vmatmul.mubr.bf16.gmra.mrb[4].mxu1 %v1247_v55 }
  0x4f   : > { %702 = vmatprep.mubr.bf16.mxu0 %v1248_v56  ;;  %766 = vmatprep.mubr.bf16.mxu1 %v1251_v57 }
  0x56   : > { %703 = vmatmul.mubr.bf16.gmra.mrb[8].mxu0 %v1250_v58  ;;  %767 = vmatmul.mubr.bf16.gmra.mrb[8].mxu1 %v1253_v59 }
  0x57   : > { %710 = vmatprep.mubr.bf16.mxu0 %v1254_v60  ;;  %774 = vmatprep.mubr.bf16.mxu1 %v1257_v61 }
  0x5e   : > { %711 = vmatmul.mubr.bf16.gmra.mrb[12].mxu0 %v1256_v62  ;;  %775 = vmatmul.mubr.bf16.gmra.mrb[12].mxu1 %v1259_v63 }
  0x5f   : > { %718 = vmatprep.mubr.bf16.mxu0 %v1260_v0  ;;  %782 = vmatprep.mubr.bf16.mxu1 %v1263_v1 }
  0x66   : > { %719 = vmatmul.mubr.bf16.gmra.mrb[16].mxu0 %v1262_v2  ;;  %783 = vmatmul.mubr.bf16.gmra.mrb[16].mxu1 %v1265_v3 }
  0x67   : > { %726 = vmatprep.mubr.bf16.mxu0 %v1266_v4  ;;  %790 = vmatprep.mubr.bf16.mxu1 %v1269_v5 }
  0x6e   : > { %727 = vmatmul.mubr.bf16.gmra.mrb[20].mxu0 %v1268_v6  ;;  %791 = vmatmul.mubr.bf16.gmra.mrb[20].mxu1 %v1271_v7 }
  0x6f   : > { %734 = vmatprep.mubr.bf16.mxu0 %v1272_v8  ;;  %798 = vmatprep.mubr.bf16.mxu1 %v1275_v9 }
  0x76   : > { %735 = vmatmul.mubr.bf16.gmra.mrb[24].mxu0 %v1274_v10  ;;  %799 = vmatmul.mubr.bf16.gmra.mrb[24].mxu1 %v1277_v11 }
  0x77   : > { %742 = vmatprep.mubr.bf16.mxu0 %v1278_v12  ;;  %806 = vmatprep.mubr.bf16.mxu1 %v1281_v13 }
  0x7e   : > { %743 = vmatmul.mubr.bf16.gmra.mrb[28].mxu0 %v1280_v14  ;;  %807 = vmatmul.mubr.bf16.gmra.mrb[28].mxu1 %v1283_v15  ;;  %v1544_v15 = vld [vmem:[%s1587_s2] ss:$0 sm:$0xff] }
 0x119   : > { %v1084_v16 = vpop.f32.mrb[0].mxu0  ;;  %v1132_v17 = vpop.f32.mrb[0].mxu1 }
 0x11a   : > { %v1085_v18 = vpop.f32.mrb[1].mxu0  ;;  %v1133_v19 = vpop.f32.mrb[1].mxu1 }
 0x11b   : > { %v1086_v20 = vadd.f32 %v1085_v18, %v1084_v16  ;;  %v1087_v21 = vpop.f32.mrb[2].mxu0  ;;  %v1134_v22 = vadd.f32 %v1133_v19, %v1132_v17  ;;  %v1135_v23 = vpop.f32.mrb[2].mxu1 }
 0x11c   : > { %v1088_v24 = vpop.f32.mrb[3].mxu0  ;;  %v1136_v25 = vpop.f32.mrb[3].mxu1 }
 0x11d   : > { %v1089_v26 = vadd.f32 %v1088_v24, %v1087_v21  ;;  %v1137_v27 = vadd.f32 %v1136_v25, %v1135_v23 }
 0x121   : > { %v1090_v28 = vpop.f32.mrb[4].mxu0  ;;  %v1138_v29 = vpop.f32.mrb[4].mxu1 }
 0x122   : > { %v1091_v30 = vpop.f32.mrb[5].mxu0  ;;  %v1139_v31 = vpop.f32.mrb[5].mxu1 }
 0x123   : > { %v1515_v32 = vadd.f32 %v1091_v30, %v1090_v28  ;;  %v1093_v33 = vpop.f32.mrb[6].mxu0  ;;  %v1517_v34 = vadd.f32 %v1139_v31, %v1138_v29  ;;  %v1141_v35 = vpop.f32.mrb[6].mxu1 }
 0x124   : > { %v1094_v36 = vpop.f32.mrb[7].mxu0  ;;  %v1142_v37 = vpop.f32.mrb[7].mxu1 }
 0x125   : > { %v1519_v38 = vadd.f32 %v1094_v36, %v1093_v33  ;;  %v1521_v39 = vadd.f32 %v1142_v37, %v1141_v35 }
 0x129   : > { %v1096_v40 = vpop.f32.mrb[8].mxu0  ;;  %v1144_v41 = vpop.f32.mrb[8].mxu1 }
 0x12a   : > { %v1097_v42 = vpop.f32.mrb[9].mxu0  ;;  %v1145_v43 = vpop.f32.mrb[9].mxu1 }
 0x12b   : > { %v1523_v44 = vadd.f32 %v1097_v42, %v1096_v40  ;;  %v1099_v45 = vpop.f32.mrb[10].mxu0  ;;  %v1525_v46 = vadd.f32 %v1145_v43, %v1144_v41  ;;  %v1147_v47 = vpop.f32.mrb[10].mxu1 }
 0x12c   : > { %v1100_v48 = vpop.f32.mrb[11].mxu0  ;;  %v1148_v49 = vpop.f32.mrb[11].mxu1 }
 0x12d   : > { %v1527_v50 = vadd.f32 %v1100_v48, %v1099_v45  ;;  %v1529_v51 = vadd.f32 %v1148_v49, %v1147_v47 }
 0x131   : > { %v1102_v52 = vpop.f32.mrb[12].mxu0  ;;  %v1150_v53 = vpop.f32.mrb[12].mxu1 }
 0x132   : > { %v1103_v54 = vpop.f32.mrb[13].mxu0  ;;  %v1151_v55 = vpop.f32.mrb[13].mxu1 }
 0x133   : > { %v1531_v56 = vadd.f32 %v1103_v54, %v1102_v52  ;;  %v1105_v57 = vpop.f32.mrb[14].mxu0  ;;  %v1533_v58 = vadd.f32 %v1151_v55, %v1150_v53  ;;  %v1153_v59 = vpop.f32.mrb[14].mxu1 }
 0x134   : > { %v1106_v60 = vpop.f32.mrb[15].mxu0  ;;  %v1154_v61 = vpop.f32.mrb[15].mxu1 }
 0x135   : > { %v1535_v62 = vadd.f32 %v1106_v60, %v1105_v57  ;;  %v1537_v63 = vadd.f32 %v1154_v61, %v1153_v59 }
 0x139   : > { %v1108_v0 = vpop.f32.mrb[16].mxu0  ;;  %v1156_v1 = vpop.f32.mrb[16].mxu1 }
 0x13a   : > { %v1109_v2 = vpop.f32.mrb[17].mxu0  ;;  %v1157_v3 = vpop.f32.mrb[17].mxu1 }
 0x13b   : > { %v1110_v4 = vadd.f32 %v1109_v2, %v1108_v0  ;;  %v1111_v5 = vpop.f32.mrb[18].mxu0  ;;  %v1158_v6 = vadd.f32 %v1157_v3, %v1156_v1  ;;  %v1159_v7 = vpop.f32.mrb[18].mxu1 }
 0x13c   : > { %v1112_v8 = vpop.f32.mrb[19].mxu0  ;;  %v1160_v9 = vpop.f32.mrb[19].mxu1 }
 0x13d   : > { %v815_v10 = vmax.f32 %v1086_v20, %v1110_v4  ;;  %v1113_v11 = vadd.f32 %v1112_v8, %v1111_v5  ;;  %v1161_v12 = vadd.f32 %v1160_v9, %v1159_v7 }
 0x13f   : > { %v816_v13 = vmax.f32 %v815_v10, %v1134_v22  ;;  %v818_v14 = vmax.f32 %v1089_v26, %v1113_v11 }
 0x141   : > { %v817_v16 = vmax.f32 %v816_v13, %v1158_v6  ;;  %v819_v17 = vmax.f32 %v818_v14, %v1137_v27  ;;  %v1114_v18 = vpop.f32.mrb[20].mxu0  ;;  %v1162_v19 = vpop.f32.mrb[20].mxu1 }
 0x142   : > { %v1115_v21 = vpop.f32.mrb[21].mxu0  ;;  %v1163_v23 = vpop.f32.mrb[21].mxu1 }
 0x143   : > { %v846_v24 = vadd.f32 %v1544_v15, %v817_v16  ;;  %v820_v20 = vmax.f32 %v819_v17, %v1161_v12  ;;  %v1116_v25 = vadd.f32 %v1115_v21, %v1114_v18  ;;  %v1117_v28 = vpop.f32.mrb[22].mxu0  ;;  %v1164_v29 = vadd.f32 %v1163_v23, %v1162_v19  ;;  %v1165_v22 = vpop.f32.mrb[22].mxu1 }
 0x144   : > { %v1118_v26 = vpop.f32.mrb[23].mxu0  ;;  %v1166_v30 = vpop.f32.mrb[23].mxu1 }
 0x145   : > { %v847_v31 = vadd.f32 %v1544_v15, %v820_v20  ;;  %v821_v33 = vmax.f32 %v1515_v32, %v1116_v25  ;;  %v1119_v35 = vadd.f32 %v1118_v26, %v1117_v28  ;;  %v1167_v27 = vadd.f32 %v1166_v30, %v1165_v22 }
 0x146   : > { %v854_v36 = vmax.f32 %v846_v24, 0.0 }
 0x147   : > { %v855_v37 = vmax.f32 %v847_v31, 0.0  ;;  %v822_v40 = vmax.f32 %v821_v33, %v1517_v34  ;;  %v824_v41 = vmax.f32 %v1519_v38, %v1119_v35 }
 0x149   : > { %v1048_v42 = vpack.c.bf16 %v855_v37, %v854_v36  ;;  %v823_v43 = vmax.f32 %v822_v40, %v1164_v29  ;;  %v825_v45 = vmax.f32 %v824_v41, %v1521_v39  ;;  %v1120_v47 = vpop.f32.mrb[24].mxu0  ;;  %v1168_v32 = vpop.f32.mrb[24].mxu1 }
 0x14a   : > { %v1121_v48 = vpop.f32.mrb[25].mxu0  ;;  %v1169_v49 = vpop.f32.mrb[25].mxu1 }
 0x14b   : > { %1049 = vst [vmem:[%s1554_s23] sm:$0xff] %v1048_v42   ;;  %v848_v52 = vadd.f32 %v1544_v15, %v823_v43  ;;  %v826_v34 = vmax.f32 %v825_v45, %v1167_v27  ;;  %v1122_v53 = vadd.f32 %v1121_v48, %v1120_v47  ;;  %v1123_v38 = vpop.f32.mrb[26].mxu0  ;;  %v1170_v54 = vadd.f32 %v1169_v49, %v1168_v32  ;;  %v1171_v55 = vpop.f32.mrb[26].mxu1 }
 0x14c   : > { %v1124_v57 = vpop.f32.mrb[27].mxu0  ;;  %v1172_v59 = vpop.f32.mrb[27].mxu1 }
 0x14d   : > { %v849_v60 = vadd.f32 %v1544_v15, %v826_v34  ;;  %v827_v61 = vmax.f32 %v1523_v44, %v1122_v53  ;;  %v1125_v39 = vadd.f32 %v1124_v57, %v1123_v38  ;;  %v1173_v0 = vadd.f32 %v1172_v59, %v1171_v55 }
 0x14e   : > { %v856_v1 = vmax.f32 %v848_v52, 0.0 }
 0x14f   : > { %v857_v2 = vmax.f32 %v849_v60, 0.0  ;;  %v828_v3 = vmax.f32 %v827_v61, %v1525_v46  ;;  %v830_v4 = vmax.f32 %v1527_v50, %v1125_v39 }
 0x151   : > { %v1053_v5 = vpack.c.bf16 %v857_v2, %v856_v1  ;;  %v829_v6 = vmax.f32 %v828_v3, %v1170_v54  ;;  %v831_v7 = vmax.f32 %v830_v4, %v1529_v51  ;;  %v1126_v8 = vpop.f32.mrb[28].mxu0  ;;  %v1174_v9 = vpop.f32.mrb[28].mxu1 }
 0x152   : > { %v1127_v10 = vpop.f32.mrb[29].mxu0  ;;  %v1175_v11 = vpop.f32.mrb[29].mxu1 }
 0x153   : > { %1065 = vst [vmem:[%s1554_s23 + $0x8] sm:$0xff] %v1053_v5   ;;  %v850_v12 = vadd.f32 %v1544_v15, %v829_v6  ;;  %v832_v44 = vmax.f32 %v831_v7, %v1173_v0  ;;  %v1128_v13 = vadd.f32 %v1127_v10, %v1126_v8  ;;  %v1129_v14 = vpop.f32.mrb[30].mxu0  ;;  %v1176_v16 = vadd.f32 %v1175_v11, %v1174_v9  ;;  %v1177_v17 = vpop.f32.mrb[30].mxu1 }
 0x154   : > { %v1130_v46 = vpop.f32.mrb[31].mxu0  ;;  %v1178_v18 = vpop.f32.mrb[31].mxu1 }
 0x155   : > { %v851_v50 = vadd.f32 %v1544_v15, %v832_v44  ;;  %v833_v19 = vmax.f32 %v1531_v56, %v1128_v13  ;;  %v1131_v51 = vadd.f32 %v1130_v46, %v1129_v14  ;;  %v1179_v21 = vadd.f32 %v1178_v18, %v1177_v17 }
 0x156   : > { %v858_v23 = vmax.f32 %v850_v12, 0.0 }
 0x157   : > { %v859_v24 = vmax.f32 %v851_v50, 0.0  ;;  %v834_v20 = vmax.f32 %v833_v19, %v1533_v58  ;;  %v836_v25 = vmax.f32 %v1535_v62, %v1131_v51 }
 0x159   : > { %v1058_v28 = vpack.c.bf16 %v859_v24, %v858_v23  ;;  %v835_v29 = vmax.f32 %v834_v20, %v1176_v16  ;;  %v837_v22 = vmax.f32 %v836_v25, %v1537_v63 }
 0x15b   : > { %1066 = vst [vmem:[%s1554_s23 + $0x10] sm:$0xff] %v1058_v28   ;;  %v852_v26 = vadd.f32 %v1544_v15, %v835_v29  ;;  %v838_v30 = vmax.f32 %v837_v22, %v1179_v21 }
 0x15d   : > { %v853_v31 = vadd.f32 %v1544_v15, %v838_v30  ;;  %v860_v56 = vmax.f32 %v852_v26, 0.0 }
 0x15f   : > { %v861_v33 = vmax.f32 %v853_v31, 0.0 }
 0x161   : > { %v1063_v35 = vpack.c.bf16 %v861_v33, %v860_v56 }
 0x163   : > { %1067 = vst [vmem:[%s1554_s23 + $0x18] sm:$0xff] %v1063_v35  }
 0x164 PF: > { %p10_p9 = scmp.ge.s32.totalorder %s1345_s16, 4   ;;  %s1589_s12 = smov %s1302_s13 }
 0x165   : > { %s1590_s13 = smov %s1354_s19  ;;  %s1591_s14 = smov %s1345_s16 }
 0x166   :  { %12 = sbr.rel (!%p10_p9) target bundleno = 2 (0x2), region = 105 }

// kernel: net_forward.5
= control target key start
LH: loop header
LB: loop body
LE: loop exit
PB: predicated region body
PF: predicated region fallthrough
CT: control target
= control target key end

     0   :  { %s1252_s1 = inlined_call_operand.vmem [shape: bf16[1024,128], index: 1, kind: input, shape index: {}]   ;;  %s1253_s0 = inlined_call_operand.vmem [shape: bf16[16,1024], index: 0, kind: input, shape index: {}]   ;;  %s1254_s2 = inlined_call_operand.vmem [shape: f32[1,128], index: 2, kind: input, shape index: {}]   ;;  %s1255_s3 = inlined_call_operand.vmem [shape: f32[16,128], index: 3, kind: output, shape index: {}]  }
   0x1   :  { %v935_v0 = vld [vmem:[%s1252_s1 + $0x40] sm:$0xff]   ;;  %v939_v4 = vld [vmem:[%s1252_s1 + $0x48] sm:$0xff]   ;;  %v943_v8 = vld [vmem:[%s1252_s1 + $0x50] sm:$0xff]  }
   0x2   :  { %v936_v1 = vld [vmem:[%s1252_s1 + $0xc0] sm:$0xff]   ;;  %847 = vmatprep.subr.bf16.mxu0 %v935_v0  ;;  %v940_v5 = vld [vmem:[%s1252_s1 + $0xc8] sm:$0xff]   ;;  %v944_v9 = vld [vmem:[%s1252_s1 + $0xd0] sm:$0xff]  }
   0x3   :  { %v937_v2 = vld [vmem:[%s1252_s1] sm:$0xff]   ;;  %869 = vmatprep.subr.bf16.mxu1 %v936_v1  ;;  %v941_v6 = vld [vmem:[%s1252_s1 + $0x8] sm:$0xff]   ;;  %v945_v10 = vld [vmem:[%s1252_s1 + $0x10] sm:$0xff]  }
   0x4   :  { %v938_v3 = vld [vmem:[%s1252_s1 + $0x80] sm:$0xff]   ;;  %848 = vmatpush3.bf16.msra.mxu0 %v937_v2  ;;  %v942_v7 = vld [vmem:[%s1252_s1 + $0x88] sm:$0xff]   ;;  %v946_v11 = vld [vmem:[%s1252_s1 + $0x90] sm:$0xff]  }
   0x5   :  { %870 = vmatpush3.bf16.msra.mxu1 %v938_v3  ;;  %849 = vmatprep.subr.bf16.mxu0 %v939_v4  ;;  %v947_v12 = vld [vmem:[%s1252_s1 + $0x58] sm:$0xff]   ;;  %v951_v16 = vld [vmem:[%s1252_s1 + $0x60] sm:$0xff]   ;;  %v955_v20 = vld [vmem:[%s1252_s1 + $0x68] sm:$0xff]  }
   0x6   :  { %871 = vmatprep.subr.bf16.mxu1 %v940_v5  ;;  %v948_v13 = vld [vmem:[%s1252_s1 + $0xd8] sm:$0xff]   ;;  %v952_v17 = vld [vmem:[%s1252_s1 + $0xe0] sm:$0xff]   ;;  %v956_v21 = vld [vmem:[%s1252_s1 + $0xe8] sm:$0xff]  }
   0x7   :  { %v949_v14 = vld [vmem:[%s1252_s1 + $0x18] sm:$0xff]   ;;  %v953_v18 = vld [vmem:[%s1252_s1 + $0x20] sm:$0xff]   ;;  %v957_v22 = vld [vmem:[%s1252_s1 + $0x28] sm:$0xff]  }
   0x8   :  { %850 = vmatpush3.bf16.msra.mxu0 %v941_v6  ;;  %v950_v15 = vld [vmem:[%s1252_s1 + $0x98] sm:$0xff]   ;;  %v954_v19 = vld [vmem:[%s1252_s1 + $0xa0] sm:$0xff]   ;;  %v958_v23 = vld [vmem:[%s1252_s1 + $0xa8] sm:$0xff]  }
   0x9   :  { %872 = vmatpush3.bf16.msra.mxu1 %v942_v7  ;;  %851 = vmatprep.subr.bf16.mxu0 %v943_v8  ;;  %v959_v24 = vld [vmem:[%s1252_s1 + $0x70] sm:$0xff]   ;;  %v963_v28 = vld [vmem:[%s1252_s1 + $0x78] sm:$0xff]   ;;  %v15_v32 = vld [vmem:[%s1253_s0] sm:$0xff] }
   0xa   :  { %873 = vmatprep.subr.bf16.mxu1 %v944_v9  ;;  %v960_v25 = vld [vmem:[%s1252_s1 + $0xf0] sm:$0xff]   ;;  %v964_v29 = vld [vmem:[%s1252_s1 + $0xf8] sm:$0xff]   ;;  %v19_v33 = vld [vmem:[%s1253_s0 + $0x20] sm:$0xff] }
   0xb   :  { %v961_v26 = vld [vmem:[%s1252_s1 + $0x30] sm:$0xff]   ;;  %v965_v30 = vld [vmem:[%s1252_s1 + $0x38] sm:$0xff]   ;;  %v16_v34 = vld [vmem:[%s1253_s0 + $0x8] sm:$0xff]  ;;  %v775_v35 = vcombine.low %v15_v32, %v19_v33  ;;  %v776_v36 = vcombine.high %v15_v32, %v19_v33 }
   0xc   :  { %852 = vmatpush3.bf16.msra.mxu0 %v945_v10  ;;  %v962_v27 = vld [vmem:[%s1252_s1 + $0xb0] sm:$0xff]   ;;  %v966_v31 = vld [vmem:[%s1252_s1 + $0xb8] sm:$0xff]   ;;  %v20_v37 = vld [vmem:[%s1253_s0 + $0x28] sm:$0xff] }
   0xd   :  { %874 = vmatpush3.bf16.msra.mxu1 %v946_v11  ;;  %853 = vmatprep.subr.bf16.mxu0 %v947_v12  ;;  %v777_v38 = vcombine.low %v16_v34, %v20_v37  ;;  %v778_v39 = vcombine.high %v16_v34, %v20_v37  ;;  %v967_v40 = vld [vmem:[%s1252_s1 + $0x140] sm:$0xff]   ;;  %v971_v44 = vld [vmem:[%s1252_s1 + $0x148] sm:$0xff]   ;;  %v975_v48 = vld [vmem:[%s1252_s1 + $0x150] sm:$0xff]  }
   0xe   :  { %875 = vmatprep.subr.bf16.mxu1 %v948_v13  ;;  %614 = vmatprep.mubr.bf16.mxu0 %v776_v36  ;;  %v968_v41 = vld [vmem:[%s1252_s1 + $0x1c0] sm:$0xff]   ;;  %v972_v45 = vld [vmem:[%s1252_s1 + $0x1c8] sm:$0xff]   ;;  %v976_v49 = vld [vmem:[%s1252_s1 + $0x1d0] sm:$0xff]  }
   0xf   :  { %655 = vmatprep.mubr.bf16.mxu1 %v778_v39  ;;  %v969_v42 = vld [vmem:[%s1252_s1 + $0x100] sm:$0xff]   ;;  %v973_v46 = vld [vmem:[%s1252_s1 + $0x108] sm:$0xff]   ;;  %v977_v50 = vld [vmem:[%s1252_s1 + $0x110] sm:$0xff]  }
  0x10   :  { %854 = vmatpush3.bf16.msra.mxu0 %v949_v14  ;;  %v970_v43 = vld [vmem:[%s1252_s1 + $0x180] sm:$0xff]   ;;  %v974_v47 = vld [vmem:[%s1252_s1 + $0x188] sm:$0xff]   ;;  %v978_v51 = vld [vmem:[%s1252_s1 + $0x190] sm:$0xff]  }
  0x11   :  { %876 = vmatpush3.bf16.msra.mxu1 %v950_v15  ;;  %855 = vmatprep.subr.bf16.mxu0 %v951_v16  ;;  %v979_v52 = vld [vmem:[%s1252_s1 + $0x158] sm:$0xff]   ;;  %v983_v56 = vld [vmem:[%s1252_s1 + $0x160] sm:$0xff]   ;;  %v987_v60 = vld [vmem:[%s1252_s1 + $0x168] sm:$0xff]  }
  0x12   :  { %877 = vmatprep.subr.bf16.mxu1 %v952_v17  ;;  %v980_v53 = vld [vmem:[%s1252_s1 + $0x1d8] sm:$0xff]   ;;  %v984_v57 = vld [vmem:[%s1252_s1 + $0x1e0] sm:$0xff]   ;;  %v988_v61 = vld [vmem:[%s1252_s1 + $0x1e8] sm:$0xff]  }
  0x13   :  { %v981_v54 = vld [vmem:[%s1252_s1 + $0x118] sm:$0xff]   ;;  %v985_v58 = vld [vmem:[%s1252_s1 + $0x120] sm:$0xff]   ;;  %v989_v62 = vld [vmem:[%s1252_s1 + $0x128] sm:$0xff]  }
  0x14   :  { %856 = vmatpush3.bf16.msra.mxu0 %v953_v18  ;;  %v982_v55 = vld [vmem:[%s1252_s1 + $0x198] sm:$0xff]   ;;  %v986_v59 = vld [vmem:[%s1252_s1 + $0x1a0] sm:$0xff]   ;;  %v990_v63 = vld [vmem:[%s1252_s1 + $0x1a8] sm:$0xff]  }
  0x15   :  { %878 = vmatpush3.bf16.msra.mxu1 %v954_v19  ;;  %857 = vmatprep.subr.bf16.mxu0 %v955_v20  ;;  %v991_v0 = vld [vmem:[%s1252_s1 + $0x170] sm:$0xff]   ;;  %v995_v4 = vld [vmem:[%s1252_s1 + $0x178] sm:$0xff]   ;;  %v774_v18 = vld [vmem:[%s1254_s2] ss:$0 sm:$0xff] }
  0x16   :  { %879 = vmatprep.subr.bf16.mxu1 %v956_v21  ;;  %v992_v1 = vld [vmem:[%s1252_s1 + $0x1f0] sm:$0xff]   ;;  %v996_v5 = vld [vmem:[%s1252_s1 + $0x1f8] sm:$0xff]  }
  0x17   :  { %v993_v2 = vld [vmem:[%s1252_s1 + $0x130] sm:$0xff]   ;;  %v997_v6 = vld [vmem:[%s1252_s1 + $0x138] sm:$0xff]  }
  0x18   :  { %858 = vmatpush3.bf16.msra.mxu0 %v957_v22  ;;  %v994_v3 = vld [vmem:[%s1252_s1 + $0x1b0] sm:$0xff]   ;;  %v998_v7 = vld [vmem:[%s1252_s1 + $0x1b8] sm:$0xff]  }
  0x19   :  { %880 = vmatpush3.bf16.msra.mxu1 %v958_v23  ;;  %859 = vmatprep.subr.bf16.mxu0 %v959_v24  ;;  %v17_v8 = vld [vmem:[%s1253_s0 + $0x10] sm:$0xff]  ;;  %v18_v12 = vld [vmem:[%s1253_s0 + $0x18] sm:$0xff] }
  0x1a   :  { %881 = vmatprep.subr.bf16.mxu1 %v960_v25  ;;  %v21_v9 = vld [vmem:[%s1253_s0 + $0x30] sm:$0xff]  ;;  %v22_v13 = vld [vmem:[%s1253_s0 + $0x38] sm:$0xff] }
  0x1b   :  { %v779_v10 = vcombine.low %v17_v8, %v21_v9  ;;  %v780_v11 = vcombine.high %v17_v8, %v21_v9  ;;  %v781_v14 = vcombine.low %v18_v12, %v22_v13  ;;  %v782_v15 = vcombine.high %v18_v12, %v22_v13 }
  0x1c   :  { %860 = vmatpush3.bf16.msra.mxu0 %v961_v26 }
  0x1d   :  { %882 = vmatpush3.bf16.msra.mxu1 %v962_v27  ;;  %861 = vmatprep.subr.bf16.mxu0 %v963_v28 }
  0x1e   :  { %883 = vmatprep.subr.bf16.mxu1 %v964_v29 }
  0x20   :  { %862 = vmatpush3.bf16.msra.mxu0 %v965_v30 }
  0x21   :  { %884 = vmatpush3.bf16.msra.mxu1 %v966_v31  ;;  %891 = vmatprep.subr.bf16.mxu0 %v967_v40 }
  0x22   :  { %913 = vmatprep.subr.bf16.mxu1 %v968_v41 }
  0x23   :  { %615 = vmatmul.mubr.bf16.vlgmr.msra.gmra.mrb[0].mxu0 %v775_v35 }
  0x24   :  { %656 = vmatmul.mubr.bf16.vlgmr.msra.gmra.mrb[0].mxu1 %v777_v38  ;;  %892 = vmatpush3.bf16.msra.mxu0 %v969_v42 }
  0x25   :  { %914 = vmatpush3.bf16.msra.mxu1 %v970_v43  ;;  %893 = vmatprep.subr.bf16.mxu0 %v971_v44 }
  0x26   :  { %915 = vmatprep.subr.bf16.mxu1 %v972_v45  ;;  %696 = vmatprep.mubr.bf16.mxu0 %v780_v11 }
  0x27   :  { %737 = vmatprep.mubr.bf16.mxu1 %v782_v15 }
  0x28   :  { %894 = vmatpush3.bf16.msra.mxu0 %v973_v46 }
  0x29   :  { %916 = vmatpush3.bf16.msra.mxu1 %v974_v47  ;;  %895 = vmatprep.subr.bf16.mxu0 %v975_v48 }
  0x2a   :  { %917 = vmatprep.subr.bf16.mxu1 %v976_v49 }
  0x2c   :  { %896 = vmatpush3.bf16.msra.mxu0 %v977_v50 }
  0x2d   :  { %918 = vmatpush3.bf16.msra.mxu1 %v978_v51  ;;  %897 = vmatprep.subr.bf16.mxu0 %v979_v52 }
  0x2e   :  { %919 = vmatprep.subr.bf16.mxu1 %v980_v53 }
  0x30   :  { %898 = vmatpush3.bf16.msra.mxu0 %v981_v54 }
  0x31   :  { %920 = vmatpush3.bf16.msra.mxu1 %v982_v55  ;;  %899 = vmatprep.subr.bf16.mxu0 %v983_v56 }
  0x32   :  { %921 = vmatprep.subr.bf16.mxu1 %v984_v57 }
  0x34   :  { %900 = vmatpush3.bf16.msra.mxu0 %v985_v58 }
  0x35   :  { %922 = vmatpush3.bf16.msra.mxu1 %v986_v59  ;;  %901 = vmatprep.subr.bf16.mxu0 %v987_v60 }
  0x36   :  { %923 = vmatprep.subr.bf16.mxu1 %v988_v61 }
  0x38   :  { %902 = vmatpush3.bf16.msra.mxu0 %v989_v62 }
  0x39   :  { %924 = vmatpush3.bf16.msra.mxu1 %v990_v63  ;;  %903 = vmatprep.subr.bf16.mxu0 %v991_v0 }
  0x3a   :  { %925 = vmatprep.subr.bf16.mxu1 %v992_v1 }
  0x3c   :  { %904 = vmatpush3.bf16.msra.mxu0 %v993_v2 }
  0x3d   :  { %926 = vmatpush3.bf16.msra.mxu1 %v994_v3  ;;  %905 = vmatprep.subr.bf16.mxu0 %v995_v4 }
  0x3e   :  { %927 = vmatprep.subr.bf16.mxu1 %v996_v5 }
  0x40   :  { %906 = vmatpush3.bf16.msra.mxu0 %v997_v6 }
  0x41   :  { %928 = vmatpush3.bf16.msra.mxu1 %v998_v7 }
  0x43   :  { %697 = vmatmul.mubr.bf16.vlgmr.msra.gmra.mrb[4].mxu0 %v779_v10 }
  0x44   :  { %738 = vmatmul.mubr.bf16.vlgmr.msra.gmra.mrb[4].mxu1 %v781_v14 }
  0xf6   :  { %v863_v16 = vpop.f32.mrb[0].mxu0 }
  0xf7   :  { %v885_v17 = vpop.f32.mrb[0].mxu1  ;;  %v864_v19 = vpop.f32.mrb[1].mxu0 }
  0xf8   :  { %v865_v20 = vadd.f32 %v864_v19, %v863_v16  ;;  %v886_v21 = vpop.f32.mrb[1].mxu1  ;;  %v866_v22 = vpop.f32.mrb[2].mxu0 }
  0xf9   :  { %v887_v23 = vadd.f32 %v886_v21, %v885_v17  ;;  %v888_v24 = vpop.f32.mrb[2].mxu1  ;;  %v867_v25 = vpop.f32.mrb[3].mxu0 }
  0xfa   :  { %v617_v26 = vadd.f32 %v865_v20, %v774_v18  ;;  %v868_v27 = vadd.f32 %v867_v25, %v866_v22  ;;  %v889_v28 = vpop.f32.mrb[3].mxu1 }
  0xfb   :  { %v890_v29 = vadd.f32 %v889_v28, %v888_v24 }
  0xfc   :  { %v658_v30 = vadd.f32 %v887_v23, %v617_v26  ;;  %v620_v31 = vadd.f32 %v868_v27, %v774_v18 }
  0xfe   :  { %v661_v32 = vadd.f32 %v890_v29, %v620_v31 }
 0x116   :  { %v907_v33 = vpop.f32.mrb[4].mxu0 }
 0x117   :  { %v929_v34 = vpop.f32.mrb[4].mxu1  ;;  %v908_v35 = vpop.f32.mrb[5].mxu0 }
 0x118   :  { %v909_v36 = vadd.f32 %v908_v35, %v907_v33  ;;  %v930_v37 = vpop.f32.mrb[5].mxu1  ;;  %v910_v38 = vpop.f32.mrb[6].mxu0 }
 0x119   :  { %v931_v39 = vadd.f32 %v930_v37, %v929_v34  ;;  %v932_v40 = vpop.f32.mrb[6].mxu1  ;;  %v911_v41 = vpop.f32.mrb[7].mxu0 }
 0x11a   :  { %v699_v42 = vadd.f32 %v909_v36, %v658_v30  ;;  %v912_v43 = vadd.f32 %v911_v41, %v910_v38  ;;  %v933_v44 = vpop.f32.mrb[7].mxu1 }
 0x11b   :  { %v934_v45 = vadd.f32 %v933_v44, %v932_v40 }
 0x11c   :  { %v740_v46 = vadd.f32 %v931_v39, %v699_v42  ;;  %v702_v47 = vadd.f32 %v912_v43, %v661_v32 }
 0x11e   :  { %v743_v48 = vadd.f32 %v934_v45, %v702_v47  ;;  %746 = vmax.xlane.f32.xlu0 %v740_v46 }
 0x122   :  { %748 = vmax.xlane.f32.xlu0 %v743_v48 }
 0x1ab   :  { %v747_v49 = vpop.xlane.xlu0 %746 }
 0x1ac   :  { %v750_v50 = vsub.f32 %v740_v46, %v747_v49 }
 0x1ae   :  { %v752_v51 = vmul.f32 1.442695, %v750_v50 }
 0x1af   :  { %v749_v52 = vpop.xlane.xlu0 %748 }
 0x1b0   :  { %v751_v53 = vsub.f32 %v743_v48, %v749_v52  ;;  %999 = vpow2.f32 %v752_v51 }
 0x1b2   :  { %v754_v54 = vmul.f32 1.442695, %v751_v53 }
 0x1b4   :  { %1001 = vpow2.f32 %v754_v54 }
 0x1ba   :  { %v1000_v55 = vpop.eup %999 }
 0x1bb   :  { %756 = vadd.xlane.f32.xlu1 %v1000_v55 }
 0x1be   :  { %v1002_v56 = vpop.eup %1001 }
 0x1bf   :  { %758 = vadd.xlane.f32.xlu1 %v1002_v56 }
 0x248   :  { %v757_v57 = vpop.xlane.xlu1 %756 }
 0x249   :  { %1003 = vlog2.f32 %v757_v57 }
 0x24c   :  { %v759_v58 = vpop.xlane.xlu1 %758 }
 0x24d   :  { %1005 = vlog2.f32 %v759_v58 }
 0x253   :  { %v1004_v59 = vpop.eup %1003 }
 0x254   :  { %v761_v60 = vmul.f32 0.6931472, %v1004_v59 }
 0x256   :  { %v764_v61 = vadd.f32 %v761_v60, %v747_v49 }
 0x257   :  { %v1006_v62 = vpop.eup %1005 }
 0x258   :  { %v766_v63 = vsub.f32 %v740_v46, %v764_v61  ;;  %v763_v0 = vmul.f32 0.6931472, %v1006_v62 }
 0x25a   :  { %768 = vst [vmem:[%s1255_s3] sm:$0xff] %v766_v63  ;;  %v765_v1 = vadd.f32 %v763_v0, %v749_v52 }
 0x25c   :  { %v767_v2 = vsub.f32 %v743_v48, %v765_v1 }
 0x25e   :  { %769 = vst [vmem:[%s1255_s3 + $0x8] sm:$0xff] %v767_v2 }

</bundles_post_ra>
